<compile_context>
chip_gen: v5e
topology: v5e:2x2
jax: 0.10.0
libtpu: 0.0.40
codegen_flags: <defaults>
</compile_context>

<pallas_src>
import functools

import jax
import jax.numpy as jnp
from jax.experimental import pallas as pl
from jax.experimental.pallas import tpu as pltpu

_EPS = 1e-5
_MIB = 1 << 20
# Keep the per-call VMEM plan comfortably inside v7x's 64 MiB physical VMEM.
_VMEM_SOFT_CAP = 44 * _MIB
# Above this, x is streamed per (n, k) tile instead of held K-resident.
_X_RESIDENT_MAX_BYTES = 24 * _MIB


def _pick_tn(n):
    """Lane-dense N tile; prefer >=2 (and even) tiles so v7x uses both TCs."""
    cands = [t for t in (512, 256, 128) if n % t == 0]
    if not cands:
        return n  # small/odd dims: full extent is exempt from the (8,128) rule
    even = [t for t in cands if (n // t) >= 2 and (n // t) % 2 == 0]
    if even:
        return even[0]
    ge2 = [t for t in cands if (n // t) >= 2]
    return ge2[0] if ge2 else cands[0]


def _pick_tk(k):
    """Reduction tile; prefer >=2 K steps so weight DMA overlaps compute."""
    cands = [t for t in (512, 256, 128) if k % t == 0]
    if not cands:
        return k
    ge2 = [t for t in cands if (k // t) >= 2]
    return ge2[0] if ge2 else cands[-1]


def _linear_bn_kernel(x_ref, w_ref, g_ref, be_ref, o_ref, acc_ref,
                      *, relu, tk, x_resident):
    """One (n, k) grid step of: y = x @ w ; BatchNorm(batch stats) ; ReLU?

    Grid = (N // tn, K // tk). acc_ref is a [B, tn] f32 accumulator resident
    across the K axis (output BlockSpec ignores k).
    """
    k = pl.program_id(1)

    @pl.when(k == 0)
    def _init():
        acc_ref[...] = jnp.zeros_like(acc_ref)

    if x_resident:
        start = pl.multiple_of(k * tk, tk)
        xb = x_ref[:, pl.ds(start, tk)]
    else:
        xb = x_ref[...]

    # MXU: bf16 x bf16 -> f32 accumulate (cast is a no-op when x is bf16).
    acc_ref[...] += jnp.dot(
        xb.astype(jnp.bfloat16), w_ref[...],
        preferred_element_type=jnp.float32,
    )

    @pl.when(k == pl.num_programs(1) - 1)
    def _epilogue():
        y = acc_ref[...]
        inv_b = 1.0 / y.shape[0]
        # Two-pass (centered) batch statistics: numerically stable, matches
        # PyTorch BatchNorm's biased batch variance.
        mean = jnp.sum(y, axis=0, keepdims=True) * inv_b
        c = y - mean
        var = jnp.sum(c * c, axis=0, keepdims=True) * inv_b
        out = c * jax.lax.rsqrt(var + _EPS)
        out = out * g_ref[...] + be_ref[...]
        if relu:
            out = jnp.maximum(out, 0.0)
        o_ref[...] = out.astype(o_ref.dtype)


def _linear_bn(x, w, g, be, *, relu, out_dtype):
    """Fused Linear (bias-free; exactly cancelled by BN) + BN + optional ReLU."""
    B, K = x.shape
    Kw, N = w.shape
    assert K == Kw, "weight must be [K_in, N_out]"

    # Params are prepared once at init; these casts are no-ops on the hot path.
    if w.dtype != jnp.bfloat16:
        w = w.astype(jnp.bfloat16)
    if g.dtype != jnp.float32 or g.ndim != 2:
        g = jnp.asarray(g, jnp.float32).reshape(1, N)
    if be.dtype != jnp.float32 or be.ndim != 2:
        be = jnp.asarray(be, jnp.float32).reshape(1, N)

    tn = _pick_tn(N)
    tk = _pick_tk(K)

    x_bytes = jnp.dtype(x.dtype).itemsize
    out_bytes = jnp.dtype(out_dtype).itemsize
    x_resident = B * K * x_bytes <= _X_RESIDENT_MAX_BYTES

    def vmem_need(tn_, tk_):
        x_need = (B * K * x_bytes) if x_resident else (2 * B * tk_ * x_bytes)
        return (x_need
                + 2 * tk_ * tn_ * 2          # double-buffered bf16 weight tile
                + 2 * 2 * tn_ * 4            # gamma / beta tiles
                + 2 * B * tn_ * out_bytes    # double-buffered output tile
                + B * tn_ * 4)               # resident f32 accumulator

    # Shrink tiles (keeping multiples of 128) until the plan fits v7x VMEM.
    while vmem_need(tn, tk) > _VMEM_SOFT_CAP:
        if tk >= 256 and tk % 256 == 0:
            tk //= 2
        elif tn >= 256 and tn % 256 == 0:
            tn //= 2
        else:
            break

    grid = (N // tn, K // tk)
    vmem_limit = min(
        max(int(1.25 * vmem_need(tn, tk)) + 4 * _MIB, 16 * _MIB), 64 * _MIB)

    if x_resident:
        x_spec = pl.BlockSpec((B, K), lambda n, k: (0, 0))   # fetched once
    else:
        x_spec = pl.BlockSpec((B, tk), lambda n, k: (0, k))  # streamed

    kernel = functools.partial(
        _linear_bn_kernel, relu=relu, tk=tk, x_resident=x_resident)

    return pl.pallas_call(
        kernel,
        out_shape=jax.ShapeDtypeStruct((B, N), out_dtype),
        grid_spec=pltpu.PrefetchScalarGridSpec(
            num_scalar_prefetch=0,
            grid=grid,
            in_specs=[
                x_spec,                                        # activations
                pl.BlockSpec((tk, tn), lambda n, k: (k, n)),   # weight tile
                pl.BlockSpec((1, tn), lambda n, k: (0, n)),    # gamma
                pl.BlockSpec((1, tn), lambda n, k: (0, n)),    # beta
            ],
            out_specs=pl.BlockSpec((B, tn), lambda n, k: (0, n)),
            scratch_shapes=[pltpu.VMEM((B, tn), jnp.float32)],
        ),
        compiler_params=pltpu.CompilerParams(
            dimension_semantics=("parallel", "arbitrary"),
            vmem_limit_bytes=vmem_limit,
        ),
    )(x, w, g, be)


def projection_mlp(x, params, num_layers=3):
    """x: [B, in_dim]. params: per-layer W [Din, Dout] (bf16) + BN gamma/beta [1, Dout]."""
    if num_layers not in (2, 3):
        raise Exception
    h = _linear_bn(x, params["w1"], params["g1"], params["be1"],
                   relu=True, out_dtype=jnp.bfloat16)
    if num_layers == 3:
        h = _linear_bn(h, params["w2"], params["g2"], params["be2"],
                       relu=True, out_dtype=jnp.bfloat16)
    # layer3: Linear -> BN, no ReLU; final output in f32 (torch fidelity).
    h = _linear_bn(h, params["w3"], params["g3"], params["be3"],
                   relu=False, out_dtype=jnp.float32)
    return h


def init_params(key, in_dim, hidden_dim, out_dim):
    """Deterministic synthetic init. Weights are cast to bf16 ONCE here so the
    hot path never recasts them (Linear biases omitted: training-mode BN
    exactly cancels them)."""
    assert out_dim == hidden_dim, (
        "layer3's BatchNorm1d(hidden_dim) requires out_dim == hidden_dim"
    )
    ks = jax.random.split(key, 9)

    def linear_w(k, din, dout):
        bound = 1.0 / jnp.sqrt(din)
        w = jax.random.uniform(k, (din, dout), jnp.float32, -bound, bound)
        return w.astype(jnp.bfloat16)

    # BN affine params randomized so the test exercises them
    # (nn.BatchNorm1d defaults are gamma=1, beta=0).
    def bn(kg, kb, d):
        g = 1.0 + 0.1 * jax.random.normal(kg, (1, d), jnp.float32)
        b = 0.1 * jax.random.normal(kb, (1, d), jnp.float32)
        return g, b

    w1 = linear_w(ks[0], in_dim, hidden_dim)
    w2 = linear_w(ks[1], hidden_dim, hidden_dim)
    w3 = linear_w(ks[2], hidden_dim, out_dim)
    g1, be1 = bn(ks[3], ks[4], hidden_dim)
    g2, be2 = bn(ks[5], ks[6], hidden_dim)
    g3, be3 = bn(ks[7], ks[8], out_dim)
    return {
        "w1": w1, "g1": g1, "be1": be1,
        "w2": w2, "g2": g2, "be2": be2,
        "w3": w3, "g3": g3, "be3": be3,
    }


def _reference(x, p, num_layers=3):
    """Pure-JAX reference mirroring the kernel's bf16-MXU / f32-BN math."""
    def layer(h, w, g, be, relu, out_dtype):
        y = jnp.dot(h.astype(jnp.bfloat16), w.astype(jnp.bfloat16),
                    preferred_element_type=jnp.float32)
        m = jnp.mean(y, axis=0, keepdims=True)
        c = y - m
        v = jnp.mean(c * c, axis=0, keepdims=True)
        y = c * jax.lax.rsqrt(v + _EPS) * g.astype(jnp.float32) + be.astype(jnp.float32)
        if relu:
            y = jnp.maximum(y, 0.0)
        return y.astype(out_dtype)

    h = layer(x, p["w1"], p["g1"], p["be1"], True, jnp.bfloat16)
    if num_layers == 3:
        h = layer(h, p["w2"], p["g2"], p["be2"], True, jnp.bfloat16)
    return layer(h, p["w3"], p["g3"], p["be3"], False, jnp.float32)


def _check(out, ref, tag):
    err = jnp.abs(out - ref)
    max_err = float(jnp.max(err))
    mean_err = float(jnp.mean(err))
    # Outputs are batch-normalized (~unit variance) and both kernel and
    # reference round intermediate activations to bf16 (ULP ~ 8e-3 near 1.0)
    # with different f32 reduction orders, so flips of a few bf16 ULP at the
    # layer boundaries are expected.  2.5e-2 bounds that; the mean check
    # guards against any systematic error.
    assert max_err < 2.5e-2 and mean_err < 5e-3, (
        f"{tag}: mismatch vs reference, max={max_err}, mean={mean_err}")


if __name__ == "__main__":
    key = jax.random.PRNGKey(0)
    k_x, k_p = jax.random.split(key)

    # Small but tiling-exercising shapes: 384 = 3 x 128 lane tiles and
    # 512 -> tk=256 (2 K steps), so multi-N and multi-K grid paths are hit.
    B, in_dim, hidden_dim, out_dim = 16, 512, 384, 384
    x = jax.random.normal(k_x, (B, in_dim), jnp.float32)
    params = init_params(k_p, in_dim, hidden_dim, out_dim)

    fwd3 = jax.jit(functools.partial(projection_mlp, num_layers=3))
    out3 = jax.block_until_ready(fwd3(x, params))
    assert out3.shape == (B, out_dim) and out3.dtype == jnp.float32
    _check(out3, _reference(x, params, num_layers=3), "num_layers=3")

    fwd2 = jax.jit(functools.partial(projection_mlp, num_layers=2))
    out2 = jax.block_until_ready(fwd2(x, params))
    assert out2.shape == (B, out_dim) and out2.dtype == jnp.float32
    _check(out2, _reference(x, params, num_layers=2), "num_layers=2")

    print("KERNEL_OK")
</pallas_src>

<mosaic_0001>
module attributes {stable_mosaic.version = 11 : i64} {
  func.func @_linear_bn_kernel(%arg0: i32, %arg1: i32, %arg2: memref<16x384xbf16, #tpu.memory_space<vmem>>, %arg3: memref<128x128xbf16, #tpu.memory_space<vmem>>, %arg4: memref<1x128xf32, #tpu.memory_space<vmem>>, %arg5: memref<1x128xf32, #tpu.memory_space<vmem>>, %arg6: memref<16x128xbf16, #tpu.memory_space<vmem>>, %arg7: memref<16x128xf32, #tpu.memory_space<vmem>>) attributes {dimension_semantics = [#tpu.dimension_semantics<parallel>, #tpu.dimension_semantics<arbitrary>], iteration_bounds = array<i64: 3, 3>, scalar_prefetch = 0 : i64, scratch_operands = 1 : i64, tpu.core_type = #tpu.core_type<tc>, window_params = [{pipeline_mode = #tpu.pipeline_mode<synchronous>, transform_indices = @transform_0, window_bounds = array<i64: 16, 384>}, {transform_indices = @transform_1, window_bounds = array<i64: 128, 128>}, {transform_indices = @transform_2, window_bounds = array<i64: 1, 128>}, {transform_indices = @transform_3, window_bounds = array<i64: 1, 128>}, {transform_indices = @transform_4, window_bounds = array<i64: 16, 128>}]} {
    %c0_i32 = arith.constant 0 : i32
    %0 = arith.cmpi eq, %arg1, %c0_i32 : i32
    %1 = arith.extui %0 : i1 to i32
    %c0_i32_0 = arith.constant 0 : i32
    %2 = arith.cmpi ne, %1, %c0_i32_0 : i32
    scf.if %2 {
      %cst_8 = arith.constant 0.000000e+00 : f32
      %15 = vector.broadcast %cst_8 : f32 to vector<16x128xf32>
      %c0_9 = arith.constant 0 : index
      %c0_10 = arith.constant 0 : index
      %16 = vector.load %arg7[%c0_9, %c0_10] : memref<16x128xf32, #tpu.memory_space<vmem>>, vector<16x128xf32>
      tpu.vector_store %arg7[%c0_9, %c0_10], %15 {strides = array<i32>} : memref<16x128xf32, #tpu.memory_space<vmem>>, vector<16x128xf32>,
    } else {
    }
    %c128_i32 = arith.constant 128 : i32
    %3 = arith.muli %arg1, %c128_i32 : i32
    %4 = tpu.assume_multiple %3, 128 : i32
    %c0 = arith.constant 0 : index
    %5 = arith.index_cast %4 : i32 to index
    %6 = vector.load %arg2[%c0, %5] : memref<16x384xbf16, #tpu.memory_space<vmem>>, vector<16x128xbf16>
    %c0_1 = arith.constant 0 : index
    %c0_2 = arith.constant 0 : index
    %7 = vector.load %arg7[%c0_1, %c0_2] : memref<16x128xf32, #tpu.memory_space<vmem>>, vector<16x128xf32>
    %c0_3 = arith.constant 0 : index
    %c0_4 = arith.constant 0 : index
    %8 = vector.load %arg3[%c0_3, %c0_4] : memref<128x128xbf16, #tpu.memory_space<vmem>>, vector<128x128xbf16>
    %cst = arith.constant dense<0.000000e+00> : vector<16x128xf32>
    %9 = tpu.matmul %6, %8, %cst {dimension_numbers = #tpu.dot_dimension_numbers<[1], [0], [0], [1], [0, 0, 1, 1], [], []>} : vector<16x128xbf16>, vector<128x128xbf16>, vector<16x128xf32> -> vector<16x128xf32>
    %10 = arith.addf %7, %9 : vector<16x128xf32>
    %c0_5 = arith.constant 0 : index
    %c0_6 = arith.constant 0 : index
    %11 = vector.load %arg7[%c0_5, %c0_6] : memref<16x128xf32, #tpu.memory_space<vmem>>, vector<16x128xf32>
    tpu.vector_store %arg7[%c0_5, %c0_6], %10 {strides = array<i32>} : memref<16x128xf32, #tpu.memory_space<vmem>>, vector<16x128xf32>,
    %c2_i32 = arith.constant 2 : i32
    %12 = arith.cmpi eq, %arg1, %c2_i32 : i32
    %13 = arith.extui %12 : i1 to i32
    %c0_i32_7 = arith.constant 0 : i32
    %14 = arith.cmpi ne, %13, %c0_i32_7 : i32
    scf.if %14 {
      %c0_8 = arith.constant 0 : index
      %c0_9 = arith.constant 0 : index
      %15 = vector.load %arg7[%c0_8, %c0_9] : memref<16x128xf32, #tpu.memory_space<vmem>>, vector<16x128xf32>
      %cst_10 = arith.constant dense<0.000000e+00> : vector<128xf32>
      %16 = vector.multi_reduction <add>, %15, %cst_10 [0] : vector<16x128xf32> to vector<128xf32>
      %17 = vector.shape_cast %16 : vector<128xf32> to vector<1x128xf32>
      %cst_11 = arith.constant 6.250000e-02 : f32
      %18 = vector.broadcast %cst_11 : f32 to vector<1x128xf32>
      %19 = arith.mulf %17, %18 : vector<1x128xf32>
      %20 = vector.broadcast %19 : vector<1x128xf32> to vector<16x128xf32>
      %21 = arith.subf %15, %20 : vector<16x128xf32>
      %22 = arith.mulf %21, %21 : vector<16x128xf32>
      %cst_12 = arith.constant dense<0.000000e+00> : vector<128xf32>
      %23 = vector.multi_reduction <add>, %22, %cst_12 [0] : vector<16x128xf32> to vector<128xf32>
      %24 = vector.shape_cast %23 : vector<128xf32> to vector<1x128xf32>
      %cst_13 = arith.constant 6.250000e-02 : f32
      %25 = vector.broadcast %cst_13 : f32 to vector<1x128xf32>
      %26 = arith.mulf %24, %25 : vector<1x128xf32>
      %cst_14 = arith.constant 9.99999974E-6 : f32
      %27 = vector.broadcast %cst_14 : f32 to vector<1x128xf32>
      %28 = arith.addf %26, %27 : vector<1x128xf32>
      %29 = math.rsqrt %28 : vector<1x128xf32>
      %30 = vector.broadcast %29 : vector<1x128xf32> to vector<16x128xf32>
      %31 = arith.mulf %21, %30 : vector<16x128xf32>
      %c0_15 = arith.constant 0 : index
      %c0_16 = arith.constant 0 : index
      %32 = vector.load %arg4[%c0_15, %c0_16] : memref<1x128xf32, #tpu.memory_space<vmem>>, vector<1x128xf32>
      %33 = vector.broadcast %32 : vector<1x128xf32> to vector<16x128xf32>
      %34 = arith.mulf %31, %33 : vector<16x128xf32>
      %c0_17 = arith.constant 0 : index
      %c0_18 = arith.constant 0 : index
      %35 = vector.load %arg5[%c0_17, %c0_18] : memref<1x128xf32, #tpu.memory_space<vmem>>, vector<1x128xf32>
      %36 = vector.broadcast %35 : vector<1x128xf32> to vector<16x128xf32>
      %37 = arith.addf %34, %36 : vector<16x128xf32>
      %cst_19 = arith.constant 0.000000e+00 : f32
      %38 = vector.broadcast %cst_19 : f32 to vector<16x128xf32>
      %39 = arith.maximumf %37, %38 : vector<16x128xf32>
      %40 = arith.truncf %39 : vector<16x128xf32> to vector<16x128xbf16>
      %c0_20 = arith.constant 0 : index
      %c0_21 = arith.constant 0 : index
      %41 = vector.load %arg6[%c0_20, %c0_21] : memref<16x128xbf16, #tpu.memory_space<vmem>>, vector<16x128xbf16>
      tpu.vector_store %arg6[%c0_20, %c0_21], %40 {strides = array<i32>} : memref<16x128xbf16, #tpu.memory_space<vmem>>, vector<16x128xbf16>,
    } else {
    }
    return
  }
  func.func @transform_0(%arg0: i32, %arg1: i32) -> (i32, i32) {
    %c0_i32 = arith.constant 0 : i32
    %c0_i32_0 = arith.constant 0 : i32
    %c0_i32_1 = arith.constant 0 : i32
    return %c0_i32, %c0_i32_0 : i32, i32
  }
  func.func @transform_1(%arg0: i32, %arg1: i32) -> (i32, i32) {
    %c0_i32 = arith.constant 0 : i32
    return %arg1, %arg0 : i32, i32
  }
  func.func @transform_2(%arg0: i32, %arg1: i32) -> (i32, i32) {
    %c0_i32 = arith.constant 0 : i32
    %c0_i32_0 = arith.constant 0 : i32
    return %c0_i32, %arg0 : i32, i32
  }
  func.func @transform_3(%arg0: i32, %arg1: i32) -> (i32, i32) {
    %c0_i32 = arith.constant 0 : i32
    %c0_i32_0 = arith.constant 0 : i32
    return %c0_i32, %arg0 : i32, i32
  }
  func.func @transform_4(%arg0: i32, %arg1: i32) -> (i32, i32) {
    %c0_i32 = arith.constant 0 : i32
    %c0_i32_0 = arith.constant 0 : i32
    return %c0_i32, %arg0 : i32, i32
  }
}

module attributes {stable_mosaic.version = 11 : i64} {
  func.func @_linear_bn_kernel(%arg0: i32, %arg1: i32, %arg2: memref<16x512xf32, #tpu.memory_space<vmem>>, %arg3: memref<256x128xbf16, #tpu.memory_space<vmem>>, %arg4: memref<1x128xf32, #tpu.memory_space<vmem>>, %arg5: memref<1x128xf32, #tpu.memory_space<vmem>>, %arg6: memref<16x128xbf16, #tpu.memory_space<vmem>>, %arg7: memref<16x128xf32, #tpu.memory_space<vmem>>) attributes {dimension_semantics = [#tpu.dimension_semantics<parallel>, #tpu.dimension_semantics<arbitrary>], iteration_bounds = array<i64: 3, 2>, scalar_prefetch = 0 : i64, scratch_operands = 1 : i64, tpu.core_type = #tpu.core_type<tc>, window_params = [{pipeline_mode = #tpu.pipeline_mode<synchronous>, transform_indices = @transform_0, window_bounds = array<i64: 16, 512>}, {transform_indices = @transform_1, window_bounds = array<i64: 256, 128>}, {transform_indices = @transform_2, window_bounds = array<i64: 1, 128>}, {transform_indices = @transform_3, window_bounds = array<i64: 1, 128>}, {transform_indices = @transform_4, window_bounds = array<i64: 16, 128>}]} {
    %c0_i32 = arith.constant 0 : i32
    %0 = arith.cmpi eq, %arg1, %c0_i32 : i32
    %1 = arith.extui %0 : i1 to i32
    %c0_i32_0 = arith.constant 0 : i32
    %2 = arith.cmpi ne, %1, %c0_i32_0 : i32
    scf.if %2 {
      %cst_8 = arith.constant 0.000000e+00 : f32
      %16 = vector.broadcast %cst_8 : f32 to vector<16x128xf32>
      %c0_9 = arith.constant 0 : index
      %c0_10 = arith.constant 0 : index
      %17 = vector.load %arg7[%c0_9, %c0_10] : memref<16x128xf32, #tpu.memory_space<vmem>>, vector<16x128xf32>
      tpu.vector_store %arg7[%c0_9, %c0_10], %16 {strides = array<i32>} : memref<16x128xf32, #tpu.memory_space<vmem>>, vector<16x128xf32>,
    } else {
    }
    %c256_i32 = arith.constant 256 : i32
    %3 = arith.muli %arg1, %c256_i32 : i32
    %4 = tpu.assume_multiple %3, 256 : i32
    %c0 = arith.constant 0 : index
    %5 = arith.index_cast %4 : i32 to index
    %6 = vector.load %arg2[%c0, %5] : memref<16x512xf32, #tpu.memory_space<vmem>>, vector<16x256xf32>
    %c0_1 = arith.constant 0 : index
    %c0_2 = arith.constant 0 : index
    %7 = vector.load %arg7[%c0_1, %c0_2] : memref<16x128xf32, #tpu.memory_space<vmem>>, vector<16x128xf32>
    %8 = arith.truncf %6 : vector<16x256xf32> to vector<16x256xbf16>
    %c0_3 = arith.constant 0 : index
    %c0_4 = arith.constant 0 : index
    %9 = vector.load %arg3[%c0_3, %c0_4] : memref<256x128xbf16, #tpu.memory_space<vmem>>, vector<256x128xbf16>
    %cst = arith.constant dense<0.000000e+00> : vector<16x128xf32>
    %10 = tpu.matmul %8, %9, %cst {dimension_numbers = #tpu.dot_dimension_numbers<[1], [0], [0], [1], [0, 0, 1, 1], [], []>} : vector<16x256xbf16>, vector<256x128xbf16>, vector<16x128xf32> -> vector<16x128xf32>
    %11 = arith.addf %7, %10 : vector<16x128xf32>
    %c0_5 = arith.constant 0 : index
    %c0_6 = arith.constant 0 : index
    %12 = vector.load %arg7[%c0_5, %c0_6] : memref<16x128xf32, #tpu.memory_space<vmem>>, vector<16x128xf32>
    tpu.vector_store %arg7[%c0_5, %c0_6], %11 {strides = array<i32>} : memref<16x128xf32, #tpu.memory_space<vmem>>, vector<16x128xf32>,
    %c1_i32 = arith.constant 1 : i32
    %13 = arith.cmpi eq, %arg1, %c1_i32 : i32
    %14 = arith.extui %13 : i1 to i32
    %c0_i32_7 = arith.constant 0 : i32
    %15 = arith.cmpi ne, %14, %c0_i32_7 : i32
    scf.if %15 {
      %c0_8 = arith.constant 0 : index
      %c0_9 = arith.constant 0 : index
      %16 = vector.load %arg7[%c0_8, %c0_9] : memref<16x128xf32, #tpu.memory_space<vmem>>, vector<16x128xf32>
      %cst_10 = arith.constant dense<0.000000e+00> : vector<128xf32>
      %17 = vector.multi_reduction <add>, %16, %cst_10 [0] : vector<16x128xf32> to vector<128xf32>
      %18 = vector.shape_cast %17 : vector<128xf32> to vector<1x128xf32>
      %cst_11 = arith.constant 6.250000e-02 : f32
      %19 = vector.broadcast %cst_11 : f32 to vector<1x128xf32>
      %20 = arith.mulf %18, %19 : vector<1x128xf32>
      %21 = vector.broadcast %20 : vector<1x128xf32> to vector<16x128xf32>
      %22 = arith.subf %16, %21 : vector<16x128xf32>
      %23 = arith.mulf %22, %22 : vector<16x128xf32>
      %cst_12 = arith.constant dense<0.000000e+00> : vector<128xf32>
      %24 = vector.multi_reduction <add>, %23, %cst_12 [0] : vector<16x128xf32> to vector<128xf32>
      %25 = vector.shape_cast %24 : vector<128xf32> to vector<1x128xf32>
      %cst_13 = arith.constant 6.250000e-02 : f32
      %26 = vector.broadcast %cst_13 : f32 to vector<1x128xf32>
      %27 = arith.mulf %25, %26 : vector<1x128xf32>
      %cst_14 = arith.constant 9.99999974E-6 : f32
      %28 = vector.broadcast %cst_14 : f32 to vector<1x128xf32>
      %29 = arith.addf %27, %28 : vector<1x128xf32>
      %30 = math.rsqrt %29 : vector<1x128xf32>
      %31 = vector.broadcast %30 : vector<1x128xf32> to vector<16x128xf32>
      %32 = arith.mulf %22, %31 : vector<16x128xf32>
      %c0_15 = arith.constant 0 : index
      %c0_16 = arith.constant 0 : index
      %33 = vector.load %arg4[%c0_15, %c0_16] : memref<1x128xf32, #tpu.memory_space<vmem>>, vector<1x128xf32>
      %34 = vector.broadcast %33 : vector<1x128xf32> to vector<16x128xf32>
      %35 = arith.mulf %32, %34 : vector<16x128xf32>
      %c0_17 = arith.constant 0 : index
      %c0_18 = arith.constant 0 : index
      %36 = vector.load %arg5[%c0_17, %c0_18] : memref<1x128xf32, #tpu.memory_space<vmem>>, vector<1x128xf32>
      %37 = vector.broadcast %36 : vector<1x128xf32> to vector<16x128xf32>
      %38 = arith.addf %35, %37 : vector<16x128xf32>
      %cst_19 = arith.constant 0.000000e+00 : f32
      %39 = vector.broadcast %cst_19 : f32 to vector<16x128xf32>
      %40 = arith.maximumf %38, %39 : vector<16x128xf32>
      %41 = arith.truncf %40 : vector<16x128xf32> to vector<16x128xbf16>
      %c0_20 = arith.constant 0 : index
      %c0_21 = arith.constant 0 : index
      %42 = vector.load %arg6[%c0_20, %c0_21] : memref<16x128xbf16, #tpu.memory_space<vmem>>, vector<16x128xbf16>
      tpu.vector_store %arg6[%c0_20, %c0_21], %41 {strides = array<i32>} : memref<16x128xbf16, #tpu.memory_space<vmem>>, vector<16x128xbf16>,
    } else {
    }
    return
  }
  func.func @transform_0(%arg0: i32, %arg1: i32) -> (i32, i32) {
    %c0_i32 = arith.constant 0 : i32
    %c0_i32_0 = arith.constant 0 : i32
    %c0_i32_1 = arith.constant 0 : i32
    return %c0_i32, %c0_i32_0 : i32, i32
  }
  func.func @transform_1(%arg0: i32, %arg1: i32) -> (i32, i32) {
    %c0_i32 = arith.constant 0 : i32
    return %arg1, %arg0 : i32, i32
  }
  func.func @transform_2(%arg0: i32, %arg1: i32) -> (i32, i32) {
    %c0_i32 = arith.constant 0 : i32
    %c0_i32_0 = arith.constant 0 : i32
    return %c0_i32, %arg0 : i32, i32
  }
  func.func @transform_3(%arg0: i32, %arg1: i32) -> (i32, i32) {
    %c0_i32 = arith.constant 0 : i32
    %c0_i32_0 = arith.constant 0 : i32
    return %c0_i32, %arg0 : i32, i32
  }
  func.func @transform_4(%arg0: i32, %arg1: i32) -> (i32, i32) {
    %c0_i32 = arith.constant 0 : i32
    %c0_i32_0 = arith.constant 0 : i32
    return %c0_i32, %arg0 : i32, i32
  }
}

module attributes {stable_mosaic.version = 11 : i64} {
  func.func @_linear_bn_kernel(%arg0: i32, %arg1: i32, %arg2: memref<16x384xbf16, #tpu.memory_space<vmem>>, %arg3: memref<128x128xbf16, #tpu.memory_space<vmem>>, %arg4: memref<1x128xf32, #tpu.memory_space<vmem>>, %arg5: memref<1x128xf32, #tpu.memory_space<vmem>>, %arg6: memref<16x128xf32, #tpu.memory_space<vmem>>, %arg7: memref<16x128xf32, #tpu.memory_space<vmem>>) attributes {dimension_semantics = [#tpu.dimension_semantics<parallel>, #tpu.dimension_semantics<arbitrary>], iteration_bounds = array<i64: 3, 3>, scalar_prefetch = 0 : i64, scratch_operands = 1 : i64, tpu.core_type = #tpu.core_type<tc>, window_params = [{pipeline_mode = #tpu.pipeline_mode<synchronous>, transform_indices = @transform_0, window_bounds = array<i64: 16, 384>}, {transform_indices = @transform_1, window_bounds = array<i64: 128, 128>}, {transform_indices = @transform_2, window_bounds = array<i64: 1, 128>}, {transform_indices = @transform_3, window_bounds = array<i64: 1, 128>}, {transform_indices = @transform_4, window_bounds = array<i64: 16, 128>}]} {
    %c0_i32 = arith.constant 0 : i32
    %0 = arith.cmpi eq, %arg1, %c0_i32 : i32
    %1 = arith.extui %0 : i1 to i32
    %c0_i32_0 = arith.constant 0 : i32
    %2 = arith.cmpi ne, %1, %c0_i32_0 : i32
    scf.if %2 {
      %cst_8 = arith.constant 0.000000e+00 : f32
      %15 = vector.broadcast %cst_8 : f32 to vector<16x128xf32>
      %c0_9 = arith.constant 0 : index
      %c0_10 = arith.constant 0 : index
      %16 = vector.load %arg7[%c0_9, %c0_10] : memref<16x128xf32, #tpu.memory_space<vmem>>, vector<16x128xf32>
      tpu.vector_store %arg7[%c0_9, %c0_10], %15 {strides = array<i32>} : memref<16x128xf32, #tpu.memory_space<vmem>>, vector<16x128xf32>,
    } else {
    }
    %c128_i32 = arith.constant 128 : i32
    %3 = arith.muli %arg1, %c128_i32 : i32
    %4 = tpu.assume_multiple %3, 128 : i32
    %c0 = arith.constant 0 : index
    %5 = arith.index_cast %4 : i32 to index
    %6 = vector.load %arg2[%c0, %5] : memref<16x384xbf16, #tpu.memory_space<vmem>>, vector<16x128xbf16>
    %c0_1 = arith.constant 0 : index
    %c0_2 = arith.constant 0 : index
    %7 = vector.load %arg7[%c0_1, %c0_2] : memref<16x128xf32, #tpu.memory_space<vmem>>, vector<16x128xf32>
    %c0_3 = arith.constant 0 : index
    %c0_4 = arith.constant 0 : index
    %8 = vector.load %arg3[%c0_3, %c0_4] : memref<128x128xbf16, #tpu.memory_space<vmem>>, vector<128x128xbf16>
    %cst = arith.constant dense<0.000000e+00> : vector<16x128xf32>
    %9 = tpu.matmul %6, %8, %cst {dimension_numbers = #tpu.dot_dimension_numbers<[1], [0], [0], [1], [0, 0, 1, 1], [], []>} : vector<16x128xbf16>, vector<128x128xbf16>, vector<16x128xf32> -> vector<16x128xf32>
    %10 = arith.addf %7, %9 : vector<16x128xf32>
    %c0_5 = arith.constant 0 : index
    %c0_6 = arith.constant 0 : index
    %11 = vector.load %arg7[%c0_5, %c0_6] : memref<16x128xf32, #tpu.memory_space<vmem>>, vector<16x128xf32>
    tpu.vector_store %arg7[%c0_5, %c0_6], %10 {strides = array<i32>} : memref<16x128xf32, #tpu.memory_space<vmem>>, vector<16x128xf32>,
    %c2_i32 = arith.constant 2 : i32
    %12 = arith.cmpi eq, %arg1, %c2_i32 : i32
    %13 = arith.extui %12 : i1 to i32
    %c0_i32_7 = arith.constant 0 : i32
    %14 = arith.cmpi ne, %13, %c0_i32_7 : i32
    scf.if %14 {
      %c0_8 = arith.constant 0 : index
      %c0_9 = arith.constant 0 : index
      %15 = vector.load %arg7[%c0_8, %c0_9] : memref<16x128xf32, #tpu.memory_space<vmem>>, vector<16x128xf32>
      %cst_10 = arith.constant dense<0.000000e+00> : vector<128xf32>
      %16 = vector.multi_reduction <add>, %15, %cst_10 [0] : vector<16x128xf32> to vector<128xf32>
      %17 = vector.shape_cast %16 : vector<128xf32> to vector<1x128xf32>
      %cst_11 = arith.constant 6.250000e-02 : f32
      %18 = vector.broadcast %cst_11 : f32 to vector<1x128xf32>
      %19 = arith.mulf %17, %18 : vector<1x128xf32>
      %20 = vector.broadcast %19 : vector<1x128xf32> to vector<16x128xf32>
      %21 = arith.subf %15, %20 : vector<16x128xf32>
      %22 = arith.mulf %21, %21 : vector<16x128xf32>
      %cst_12 = arith.constant dense<0.000000e+00> : vector<128xf32>
      %23 = vector.multi_reduction <add>, %22, %cst_12 [0] : vector<16x128xf32> to vector<128xf32>
      %24 = vector.shape_cast %23 : vector<128xf32> to vector<1x128xf32>
      %cst_13 = arith.constant 6.250000e-02 : f32
      %25 = vector.broadcast %cst_13 : f32 to vector<1x128xf32>
      %26 = arith.mulf %24, %25 : vector<1x128xf32>
      %cst_14 = arith.constant 9.99999974E-6 : f32
      %27 = vector.broadcast %cst_14 : f32 to vector<1x128xf32>
      %28 = arith.addf %26, %27 : vector<1x128xf32>
      %29 = math.rsqrt %28 : vector<1x128xf32>
      %30 = vector.broadcast %29 : vector<1x128xf32> to vector<16x128xf32>
      %31 = arith.mulf %21, %30 : vector<16x128xf32>
      %c0_15 = arith.constant 0 : index
      %c0_16 = arith.constant 0 : index
      %32 = vector.load %arg4[%c0_15, %c0_16] : memref<1x128xf32, #tpu.memory_space<vmem>>, vector<1x128xf32>
      %33 = vector.broadcast %32 : vector<1x128xf32> to vector<16x128xf32>
      %34 = arith.mulf %31, %33 : vector<16x128xf32>
      %c0_17 = arith.constant 0 : index
      %c0_18 = arith.constant 0 : index
      %35 = vector.load %arg5[%c0_17, %c0_18] : memref<1x128xf32, #tpu.memory_space<vmem>>, vector<1x128xf32>
      %36 = vector.broadcast %35 : vector<1x128xf32> to vector<16x128xf32>
      %37 = arith.addf %34, %36 : vector<16x128xf32>
      %c0_19 = arith.constant 0 : index
      %c0_20 = arith.constant 0 : index
      %38 = vector.load %arg6[%c0_19, %c0_20] : memref<16x128xf32, #tpu.memory_space<vmem>>, vector<16x128xf32>
      tpu.vector_store %arg6[%c0_19, %c0_20], %37 {strides = array<i32>} : memref<16x128xf32, #tpu.memory_space<vmem>>, vector<16x128xf32>,
    } else {
    }
    return
  }
  func.func @transform_0(%arg0: i32, %arg1: i32) -> (i32, i32) {
    %c0_i32 = arith.constant 0 : i32
    %c0_i32_0 = arith.constant 0 : i32
    %c0_i32_1 = arith.constant 0 : i32
    return %c0_i32, %c0_i32_0 : i32, i32
  }
  func.func @transform_1(%arg0: i32, %arg1: i32) -> (i32, i32) {
    %c0_i32 = arith.constant 0 : i32
    return %arg1, %arg0 : i32, i32
  }
  func.func @transform_2(%arg0: i32, %arg1: i32) -> (i32, i32) {
    %c0_i32 = arith.constant 0 : i32
    %c0_i32_0 = arith.constant 0 : i32
    return %c0_i32, %arg0 : i32, i32
  }
  func.func @transform_3(%arg0: i32, %arg1: i32) -> (i32, i32) {
    %c0_i32 = arith.constant 0 : i32
    %c0_i32_0 = arith.constant 0 : i32
    return %c0_i32, %arg0 : i32, i32
  }
  func.func @transform_4(%arg0: i32, %arg1: i32) -> (i32, i32) {
    %c0_i32 = arith.constant 0 : i32
    %c0_i32_0 = arith.constant 0 : i32
    return %c0_i32, %arg0 : i32, i32
  }
}

</mosaic_0001>

<bundles_post_ra>
// kernel: projection_mlp.3
= control target key start
LH: loop header
LB: loop body
LE: loop exit
PB: predicated region body
PF: predicated region fallthrough
CT: control target
= control target key end

     0   :  { %s1412_s0 = inlined_call_operand.hbm [shape: f32[16,512], index: 0, kind: input, shape index: {}]   ;;  %s1413_s1 = inlined_call_operand.hbm [shape: bf16[512,384], index: 1, kind: input, shape index: {}]   ;;  %s1414_s2 = inlined_call_operand.vmem [shape: f32[1,384], index: 2, kind: input, shape index: {}]   ;;  %s1415_s3 = inlined_call_operand.hbm [shape: f32[1,384], index: 3, kind: input, shape index: {}]   ;;  %s1416_s4 = inlined_call_operand.vmem [shape: bf16[16,384], index: 4, kind: output, shape index: {}]  }
   0x1   :  { %1419 = sst [smem:[#allocation14_spill]] %s1412_s0 }
   0x2   :  { %1420 = sst [smem:[#allocation15_spill]] %s1413_s1 }
   0x3   :  { %1421 = sst [smem:[#allocation16_spill]] %s1414_s2 }
   0x4   :  { %1422 = sst [smem:[#allocation17_spill]] %s1416_s4 }
   0x5   :  { %9 = vsyncpa [#allocation4], 0 }
   0x6   :  { %10 = vsyncpa [#allocation6], 0 }
   0x7   :  { %12 = vsyncpa [#allocation6 + $0x1], 0  ;;  %s1148_s15 = smov 0   ;;  %s1150_s16 = smov 0  }
   0x8   :  { %s1152_s17 = smov 0   ;;  %s1154_s18 = smov 0  }
   0x9   :  { %s1156_s19 = smov 0   ;;  %s1158_s20 = smov 0  }
   0xa   :  { %s1160_s21 = smov 0   ;;  %s1162_s22 = smov 0  }
   0xb   :  { %s1164_s23 = smov 0   ;;  %s1166_s24 = smov 0  }
   0xc   :  { %s1168_s25 = smov 0  }
   0xd LB: > { %1423 = sst [smem:[#allocation12_spill]] %s1098_s21  ;;  %s27_s26 = sadd.s32 1, %s1106_s23  ;;  %s1114_s25 = sphi %s1168_s25, %s18_s25   ;;  %s1110_s24 = sphi %s1166_s24, %s1452_s24   ;;  %s1106_s23 = sphi %s1164_s23, %s1451_s23   ;;  %s1102_s22 = sphi %s1162_s22, %s1450_s22   ;;  %s1098_s21 = sphi %s1160_s21, %s1449_s21   ;;  %s1094_s20 = sphi %s1158_s20, %s1448_s20   ;;  %s1090_s19 = sphi %s1156_s19, %s1447_s19   ;;  %s1086_s18 = sphi %s1154_s18, %s1446_s18   ;;  %s1082_s17 = sphi %s1152_s17, %s1445_s17   ;;  %s1078_s16 = sphi %s1150_s16, %s1444_s16   ;;  %s1074_s15 = sphi %s1148_s15, %s1443_s15  }
   0xe   : > { %1424 = sst [smem:[#allocation13_spill]] %s1102_s22  ;;  %p1205_p0 = scmp.ge.s32.totalorder %s27_s26, 2 }
   0xf   : > { %p67_p1 = scmp.ne.s32.totalorder %s1094_s20, %s1090_s19  ;;  %p68_p2 = scmp.eq.s32.totalorder %s1114_s25, 0 }
  0x10   : > { %s1454_s26 = smov (%p1205_p0, %s27_s26), 0  ;;  %p73_p4 = scmp.ne.s32.totalorder %s1090_s19, %s1086_s18 }
  0x11   : > { %p69_p3 = por %p68_p2, %p67_p1  ;;  %p825_p5 = scmp.lt.s32.totalorder %s1114_s25, 6 }
  0x12   : > { %s189_s5 = sand.u32 1, %s1114_s25   ;;  %s191_s6 = sand.u32 1, %s1094_s20  }
  0x13   : > { %s703_s7 = sshll.u32 %s191_s6, 7  ;;  %s804_s8 = smul.u32 96, %s1106_s23 }
  0x14   : > { %p818_p6 = pnand %p825_p5, %p69_p3  ;;  %s193_s10 = scalar_lea.vmem [#allocation5], %s703_s7 }
  0x15   : > { %s198_s9 = sadd.s32 %s1110_s24, %s804_s8  ;;  %s203_s11 = sshll.u32 %s193_s10, 4  ;;  %s204_s11 = int_to_ptr.vmem [resolvable:$true] %s203_s11 }
  0x16   : > { %s706_s12 = sshll.u32 %s198_s9, 2  ;;  %s1426_s1 = sld [smem:[#allocation15_spill]] }
  0x17   : > { %s1233_s6 = scalar_lea.sflag [#allocation6], %s189_s5  ;;  %s1116_s27 = smov 192  }
  0x18   : > { %s1117_s4 = smov 64   ;;  %s1118_s21 = smov 4  }
  0x19   : > { %s1237_s8 = sadd.s32 4294967295, %s1114_s25   ;;  %p700_p8 = scmp.ge.s32.totalorder %s1114_s25, 1 }
  0x1a   : > { %p74_p7 = scmp.eq.s32.totalorder %s1237_s8, 0  ;;  %p162_p9 = scmp.lt.s32.totalorder %s1114_s25, 7 }
  0x1b   : > { %s1428_s0 = sld [smem:[#allocation14_spill]]  ;;  %s1119_s18 = smov [#allocation3]  }
  0x1c   : > { %s200_s29 = scalar_lea.hbm %s1426_s1, %s706_s12  ;;  %p1247_p10 = por %p74_p7, %p73_p4 }
  0x1d   : > { %s201_s30 = sshll.u32 %s200_s29, 4  ;;  %p1254_p11 = pnand %p700_p8, %p162_p9  ;;  %s202_s30 = int_to_ptr.hbm [resolvable:$true] %s201_s30 }
  0x1e   : > { %820 = dma.hbm_to_vmem [thread:$0]  (!%p818_p6), %s202_s30, 2048, %s204_s11, %s1233_s6, %s1116_s27, %s1117_s4, %s1118_s21  }
  0x1f   : > { %p813_p12 = pneg %p1254_p11  ;;  %s175_s5 = sshll.u32 %s1119_s18, 4  ;;  %s176_s5 = int_to_ptr.vmem [resolvable:$true] %s175_s5 }
  0x20   : > { %s1120_s7 = smov 512   ;;  %s1121_s9 = smov 32  }
  0x21   : > { %s173_s27 = sshll.u32 %s1428_s0, 4  ;;  %p814_p13 = pnand %p813_p12, %p74_p7  ;;  %s174_s27 = int_to_ptr.hbm [resolvable:$true] %s173_s27 }
  0x22   : > { %s1430_s10 = sadd.s32 1, %s1110_s24  ;;  %s112_s11 = sadd.s32 1, %s1082_s17 }
  0x23   : > { %816 = dma.hbm_to_vmem [thread:$0]  (!%p814_p13), %s174_s27, 1024, %s176_s5, [#allocation4], %s1120_s7, %s1120_s7, %s1121_s9  }
  0x24   : > { %s1456_s10 = smov (!%p1205_p0, %s1430_s10), %s1110_s24  ;;  %p119_p1 = scmp.ne.s32.totalorder %s1082_s17, %s1078_s16 }
  0x25   : > { %p32_p3 = scmp.ge.s32.totalorder %s1456_s10, 3  ;;  %p125_p4 = scmp.ne.s32.totalorder %s1078_s16, %s1074_s15 }
  0x26   : > { %p1274_p6 = por %p119_p1, %p68_p2  ;;  %p149_p8 = scmp.eq.s32.totalorder %s1237_s8, 5 }
  0x27   : > { %s1458_s10 = smov (%p32_p3, %s1456_s10), 0  ;;  %p1283_p0 = por %p125_p4, %p74_p7 }
  0x28   : > { %p1287_p9 = por %p149_p8, %p119_p1  ;;  %s56_s15 = ssub.s32 %s1110_s24, %s1458_s10 }
  0x29   : > { %s221_s14 = sand.u32 1, %s1082_s17   ;;  %s1434_s4 = ssub.s32 %s1106_s23, %s1454_s26 }
  0x2a   : > { %s57_s21 = sor.u32 %s56_s15, %s1434_s4  ;;  %p110_p2 = scmp.eq.s32.totalorder %s56_s15, 0 }
  0x2b   : > { %p58_p12 = scmp.eq.s32.totalorder %s57_s21, 0  ;;  %s1435_s18 = sadd.s32 1, %s1094_s20 }
  0x2c   : > { %s1298_s27 = scalar_select %p110_p2, %s1082_s17, %s112_s11  }
  0x2d   : > { %s1303_s5 = scalar_select %p58_p12, %s1094_s20, %s1435_s18  }
  0x2e   : > { %s225_s0 = scalar_lea.hbm %s1415_s3, %s1110_s24  ;;  %s222_s1 = scalar_lea.vmem [#allocation7], %s221_s14 }
  0x2f   : > { %s229_s2 = sshll.u32 %s222_s1, 4  ;;  %s227_s22 = sshll.u32 %s225_s0, 4  ;;  %s230_s2 = int_to_ptr.vmem [resolvable:$true] %s229_s2  ;;  %s228_s22 = int_to_ptr.hbm [resolvable:$true] %s227_s22 }
  0x30   : > { %p821_p13 = pnand %p825_p5, %p1274_p6  ;;  %238 = sbr.rel (%p1254_p11) target bundleno = 335 (0x14f), region = 36 }
  0x32   : > { %823 = dma.hbm_to_vmem [thread:$0]  (!%p821_p13), %s228_s22, 16, %s230_s2, %s1233_s6  }
  0x35   : > { %1061 = dma.done.wait (%p74_p7), [#allocation4], 1024  }
  0x36   : > { %1063 = vsyncadd (%p74_p7), [#allocation4], 4294966272  ;;  %s245_s1 = sand.u32 1, %s1237_s8   ;;  %s247_s0 = sand.u32 1, %s1090_s19  }
  0x37   : > { %s709_s11 = sshll.u32 %s247_s0, 7  ;;  %s246_s15 = scalar_lea.sflag [#allocation6], %s245_s1 }
  0x38   : > { %s1322_s12 = scalar_lea.vmem [#allocation5], %s709_s11 }
  0x39   : > { %1065 = dma.done.wait (%p1247_p10), %s246_s15, 2048  }
  0x3a   : > { %1067 = vsyncadd (%p1247_p10), %s246_s15, 4294965248  ;;  %s257_s2 = sand.u32 1, %s1078_s16  }
  0x3b   : > { %s1329_s22 = scalar_lea.vmem [#allocation7], %s257_s2 }
  0x3c   : > { %1069 = dma.done.wait (%p1283_p0), %s246_s15, 16  }
  0x3d   : > { %1071 = vsyncadd (%p1283_p0), %s246_s15, 4294967280  ;;  %s1436_s6 = sld [smem:[#allocation13_spill]]  ;;  %s710_s8 = sshll.u32 %s257_s2, 3 }
  0x3e   : > { %s1437_s14 = sld [smem:[#allocation16_spill]]  ;;  %s1343_s21 = scalar_lea.vmem [#allocation8], %s710_s8 }
  0x3f   : > { %s1438_s18 = sld [smem:[#allocation12_spill]] }
  0x43   : > { %p291_p5 = scmp.lt.s32.totalorder %s1436_s6, 2 }
  0x45   : > { %s1460_s6 = smov (!%p291_p5, %s1436_s6), 2  ;;  %p711_p7 = scmp.ne.s32.totalorder %s1438_s18, 0 }
  0x46   : > { %s293_s4 = scalar_lea.vmem %s1437_s14, %s1460_s6 }
  0x47   : > { %297 = sbr.rel (%p711_p7) target bundleno = 79 (0x4f), region = 52 }
  0x4c   : > { %v1122_v0 = vmov 0.0  }
  0x4d   : > { %298 = vst [vmem:[#allocation2] sm:$0xff] %v1122_v0 }
  0x4e   : > { %299 = vst [vmem:[#allocation2 + $0x8] sm:$0xff] %v1122_v0 }
  0x4f PF: > { %s1439_s28 = sld [smem:[#allocation12_spill]]  ;;  %v790_v1 = vld [vmem:[%s1322_s12 + $0x38] sm:$0xff]  ;;  %v789_v3 = vld [vmem:[%s1322_s12 + $0x30] sm:$0xff]  ;;  %v788_v5 = vld [vmem:[%s1322_s12 + $0x28] sm:$0xff] }
  0x50   : > { %v798_v2 = vld [vmem:[%s1322_s12 + $0x78] sm:$0xff]  ;;  %441 = vmatpush.bf16.msra.mxu0 %v790_v1  ;;  %v797_v4 = vld [vmem:[%s1322_s12 + $0x70] sm:$0xff]  ;;  %v796_v6 = vld [vmem:[%s1322_s12 + $0x68] sm:$0xff] }
  0x51   : > { %455 = vmatpush.bf16.msra.mxu1 %v798_v2  ;;  %v787_v7 = vld [vmem:[%s1322_s12 + $0x20] sm:$0xff]  ;;  %v786_v9 = vld [vmem:[%s1322_s12 + $0x18] sm:$0xff]  ;;  %v785_v11 = vld [vmem:[%s1322_s12 + $0x10] sm:$0xff] }
  0x52   : > { %v795_v8 = vld [vmem:[%s1322_s12 + $0x60] sm:$0xff]  ;;  %v794_v10 = vld [vmem:[%s1322_s12 + $0x58] sm:$0xff]  ;;  %v793_v12 = vld [vmem:[%s1322_s12 + $0x50] sm:$0xff] }
  0x53   : > { %v784_v13 = vld [vmem:[%s1322_s12 + $0x8] sm:$0xff]  ;;  %v783_v15 = vld [vmem:[%s1322_s12] sm:$0xff] }
  0x54   : > { %442 = vmatpush.bf16.msra.mxu0 %v789_v3  ;;  %v792_v14 = vld [vmem:[%s1322_s12 + $0x48] sm:$0xff]  ;;  %v791_v16 = vld [vmem:[%s1322_s12 + $0x40] sm:$0xff]  ;;  %v309_v24 = vld [vmem:[#allocation2] sm:$0xff] }
  0x55   : > { %456 = vmatpush.bf16.msra.mxu1 %v797_v4  ;;  %s712_s7 = sshll.u32 %s1439_s28, 8  ;;  %v310_v29 = vld [vmem:[#allocation2 + $0x8] sm:$0xff]  ;;  %p778_p10 = scmp.ne.s32.totalorder %s1439_s28, 1 }
  0x56   : > { %s301_s9 = sshra.s32 %s712_s7, 7 }
  0x57   : > { %s713_s1 = sshll.u32 %s301_s9, 3 }
  0x58   : > { %443 = vmatpush.bf16.msra.mxu0 %v788_v5  ;;  %s304_s0 = scalar_lea.vmem [#allocation3], %s713_s1 }
  0x59   : > { %457 = vmatpush.bf16.msra.mxu1 %v796_v6  ;;  %v305_v17 = vld [vmem:[%s304_s0] sm:$0xff]  ;;  %v306_v19 = vld [vmem:[%s304_s0 + $0x8] sm:$0xff] }
  0x5a   : > { %v307_v18 = vld [vmem:[%s304_s0 + $0x20] sm:$0xff]  ;;  %v308_v20 = vld [vmem:[%s304_s0 + $0x28] sm:$0xff] }
  0x5b   : > { %v311_v21 = vpack.c.bf16 %v307_v18, %v305_v17  ;;  %v312_v22 = vpack.c.bf16 %v308_v20, %v306_v19 }
  0x5c   : > { %444 = vmatpush.bf16.msra.mxu0 %v787_v7 }
  0x5d   : > { %458 = vmatpush.bf16.msra.mxu1 %v795_v8 }
  0x60   : > { %445 = vmatpush.bf16.msra.mxu0 %v786_v9 }
  0x61   : > { %459 = vmatpush.bf16.msra.mxu1 %v794_v10 }
  0x64   : > { %446 = vmatpush.bf16.msra.mxu0 %v785_v11 }
  0x65   : > { %460 = vmatpush.bf16.msra.mxu1 %v793_v12 }
  0x68   : > { %447 = vmatpush.bf16.msra.mxu0 %v784_v13 }
  0x69   : > { %461 = vmatpush.bf16.msra.mxu1 %v792_v14 }
  0x6c   : > { %448 = vmatpush.bf16.msra.mxu0 %v783_v15 }
  0x6d   : > { %462 = vmatpush.bf16.msra.mxu1 %v791_v16 }
  0x6f   : > { %449 = vmatmul.bf16.vlgmr.msra.gmra.mxu0 %v311_v21 }
  0x70   : > { %463 = vmatmul.bf16.vlgmr.msra.gmra.mxu1 %v312_v22 }
  0xec   : > { %v450_v23 = vpop.f32.mrf.mxu0 }
  0xed   : > { %v464_v25 = vpop.f32.mrf.mxu1 }
  0xee   : > { %v465_v26 = vadd.f32 %v464_v25, %v450_v23 }
  0xf0   : > { %v469_v27 = vadd.f32 %v465_v26, %v309_v24 }
  0xf2   : > { %471 = vst [vmem:[#allocation2] sm:$0xff] %v469_v27 }
  0xf4   : > { %v452_v28 = vpop.f32.mrf.mxu0 }
  0xf5   : > { %v466_v30 = vpop.f32.mrf.mxu1 }
  0xf6   : > { %v467_v31 = vadd.f32 %v466_v30, %v452_v28  ;;  %476 = sbr.rel (%p778_p10) target bundleno = 325 (0x145), region = 56 }
  0xf8   : > { %v470_v32 = vadd.f32 %v467_v31, %v310_v29 }
  0xfa   : > { %472 = vst [vmem:[#allocation2 + $0x8] sm:$0xff] %v470_v32 }
  0xfb   : > { %v477_v33 = vld [vmem:[#allocation2] sm:$0xff] }
  0xfc   : > { %v922_v62 = vld [vmem:[%s293_s4] ss:$0 sm:$0xff] }
  0xfd   : > { %v923_v2 = vld [vmem:[%s1329_s22] ss:$0 sm:$0xff] }
 0x101   : > { %v478_v34 = vld [vmem:[#allocation2 + $0x8] sm:$0xff] }
 0x102   : > { %v479_v35 = vadd.f32 %v478_v34, %v477_v33 }
 0x104   : > { %v480_v36 = vrot.slane %v479_v35, 4 }
 0x106   : > { %v481_v37 = vadd.f32 %v480_v36, %v479_v35 }
 0x108   : > { %v482_v38 = vrot.slane %v481_v37, 2 }
 0x10a   : > { %v483_v39 = vadd.f32 %v482_v38, %v481_v37 }
 0x10c   : > { %v484_v40 = vrot.slane %v483_v39, 1 }
 0x10e   : > { %v485_v41 = vadd.f32 %v484_v40, %v483_v39 }
 0x110   : > { %v486_v42 = vmul.f32 0.0625, %v485_v41 }
 0x112   : > { %v487_v43 = vsub.f32 %v477_v33, %v486_v42  ;;  %v488_v44 = vsub.f32 %v478_v34, %v486_v42 }
 0x114   : > { %v489_v45 = vmul.f32 %v487_v43, %v487_v43  ;;  %v490_v46 = vmul.f32 %v488_v44, %v488_v44 }
 0x116   : > { %v491_v47 = vadd.f32 %v490_v46, %v489_v45 }
 0x118   : > { %v492_v48 = vrot.slane %v491_v47, 4 }
 0x11a   : > { %v493_v49 = vadd.f32 %v492_v48, %v491_v47 }
 0x11c   : > { %v494_v50 = vrot.slane %v493_v49, 2 }
 0x11e   : > { %v495_v51 = vadd.f32 %v494_v50, %v493_v49 }
 0x120   : > { %v496_v52 = vrot.slane %v495_v51, 1 }
 0x122   : > { %v497_v53 = vadd.f32 %v496_v52, %v495_v51 }
 0x124   : > { %v498_v54 = vmul.f32 0.0625, %v497_v53 }
 0x126   : > { %v499_v55 = vadd.f32 1e-05, %v498_v54 }
 0x128   : > { %924 = vrsqrt.f32 %v499_v55  ;;  %vm506_vm0 = vweird.f32 %v499_v55 }
 0x12e   : > { %v925_v56 = vpop.eup %924 }
 0x12f   : > { %v501_v57 = vmul.f32 %v925_v56, %v499_v55  ;;  %vm507_vm1 = vweird.f32 %v925_v56 }
 0x130   : > { %vm508_vm2 = vmor %vm506_vm0, %vm507_vm1 }
 0x131   : > { %v502_v58 = vmul.f32 %v925_v56, %v501_v57 }
 0x133   : > { %v503_v59 = vmul.f32 0.5, %v502_v58 }
 0x135   : > { %v504_v60 = vsub.f32 1.5, %v503_v59 }
 0x137   : > { %v505_v61 = vmul.f32 %v925_v56, %v504_v60 }
 0x139   : > { %v509_v63 = vsel %vm508_vm2, %v925_v56, %v505_v61 }
 0x13a   : > { %v510_v0 = vmul.f32 %v509_v63, %v487_v43  ;;  %v511_v1 = vmul.f32 %v509_v63, %v488_v44 }
 0x13c   : > { %v516_v3 = vmul.f32 %v922_v62, %v510_v0  ;;  %v517_v4 = vmul.f32 %v922_v62, %v511_v1 }
 0x13e   : > { %v522_v5 = vadd.f32 %v923_v2, %v516_v3  ;;  %v523_v6 = vadd.f32 %v923_v2, %v517_v4 }
 0x140   : > { %v524_v7 = vmax.f32 %v522_v5, 0.0  ;;  %v525_v8 = vmax.f32 %v523_v6, 0.0 }
 0x142   : > { %v802_v9 = vpack.c.bf16 %v525_v8, %v524_v7 }
 0x144   : > { %803 = vst [vmem:[%s1343_s21] sm:$0xff] %v802_v9  }
 0x145 PF: > { %536 = sbr.rel (!%p1287_p9) target bundleno = 335 (0x14f), region = 60  ;;  %s1441_s2 = sld [smem:[#allocation13_spill]] (%p1287_p9) }
 0x146   : > { %s1442_s30 = sld [smem:[#allocation17_spill]] (%p1287_p9) }
 0x14b   : > { %s780_s6 = sshll.u32 %s1441_s2, 2  ;;  %v555_v10 = vld [vmem:[%s1343_s21] sm:$0xf]  ;;  %v557_v11 = vld [vmem:[%s1343_s21 + $0x4] sm:$0xf] }
 0x14c   : > { %s538_s29 = scalar_lea.vmem %s1442_s30, %s780_s6 }
 0x14d   : > { %556 = vst [vmem:[%s538_s29] sm:$0xf] %v555_v10 }
 0x14e   : > { %558 = vst [vmem:[%s538_s29 + $0xc] sm:$0xf] %v557_v11 }
 0x14f PF: > { %s18_s25 = sadd.s32 1, %s1114_s25   ;;  %s1443_s15 = smov %s1078_s16 }
 0x150   : > { %p15_p11 = scmp.ge.s32.totalorder %s18_s25, 8   ;;  %s1444_s16 = smov %s1082_s17 }
 0x151   : > { %s1445_s17 = smov %s1298_s27  ;;  %s1446_s18 = smov %s1090_s19 }
 0x152   : > { %s1447_s19 = smov %s1094_s20  ;;  %s1448_s20 = smov %s1303_s5 }
 0x153   : > { %s1449_s21 = smov %s1106_s23  ;;  %s1450_s22 = smov %s1110_s24 }
 0x154   : > { %s1451_s23 = smov %s1454_s26  ;;  %s1452_s24 = smov %s1458_s10 }
 0x155   :  { %17 = sbr.rel (!%p15_p11) target bundleno = 13 (0xd), region = 145 }
 0x15a   :  { %596 = vsyncpa [#allocation4], 1 }
 0x15b   :  { %598 = vsyncpa [#allocation4 + $0x1], 1 }
 0x15c   :  { %599 = vsyncpa [#allocation6], 1 }
 0x15d   :  { %601 = vsyncpa [#allocation6 + $0x1], 1 }

// kernel: projection_mlp.5
= control target key start
LH: loop header
LB: loop body
LE: loop exit
PB: predicated region body
PF: predicated region fallthrough
CT: control target
= control target key end

     0   :  { %s1292_s0 = inlined_call_operand.vmem [shape: bf16[16,384], index: 0, kind: input, shape index: {}]   ;;  %s1293_s1 = inlined_call_operand.hbm [shape: bf16[384,384], index: 1, kind: input, shape index: {}]   ;;  %s1294_s2 = inlined_call_operand.hbm [shape: f32[1,384], index: 2, kind: input, shape index: {}]   ;;  %s1295_s3 = inlined_call_operand.hbm [shape: f32[1,384], index: 3, kind: input, shape index: {}]   ;;  %s1296_s4 = inlined_call_operand.hbm [shape: f32[16,384], index: 4, kind: output, shape index: {}]  }
   0x1   :  { %1310 = sst [smem:[#allocation25_spill]] %s1292_s0 }
   0x2   :  { %1311 = sst [smem:[#allocation26_spill]] %s1294_s2 }
   0x3   :  { %1312 = sst [smem:[#allocation27_spill]] %s1296_s4 }
   0x4   :  { %9 = vsyncpa [#allocation4], 0 }
   0x5   :  { %11 = vsyncpa [#allocation4 + $0x1], 0 }
   0x6   :  { %12 = vsyncpa [#allocation7], 0 }
   0x7   :  { %14 = vsyncpa [#allocation7 + $0x1], 0 }
   0x8   :  { %15 = vsyncpa [#allocation5], 0 }
   0x9   :  { %17 = vsyncpa [#allocation5 + $0x1], 0  ;;  %s1034_s15 = smov 0   ;;  %s1036_s16 = smov 0  }
   0xa   :  { %s1038_s17 = smov 0   ;;  %s1040_s18 = smov 0  }
   0xb   :  { %s1042_s19 = smov 0   ;;  %s1044_s20 = smov 0  }
   0xc   :  { %s1046_s21 = smov 0   ;;  %s1048_s22 = smov 0  }
   0xd   :  { %s1050_s23 = smov 0   ;;  %s1052_s24 = smov 0  }
   0xe   :  { %s1054_s25 = smov 0  }
   0xf LB: > { %1313 = sst [smem:[#allocation13_spill]] %s960_s15  ;;  %s1088_s26 = sadd.s32 4294967295, %s1000_s25   ;;  %s1000_s25 = sphi %s1054_s25, %s23_s25   ;;  %s996_s24 = sphi %s1052_s24, %s1357_s24   ;;  %s992_s23 = sphi %s1050_s23, %s1349_s23   ;;  %s988_s22 = sphi %s1048_s22, %s1356_s22   ;;  %s984_s21 = sphi %s1046_s21, %s1348_s21   ;;  %s980_s20 = sphi %s1044_s20, %s1347_s20   ;;  %s976_s19 = sphi %s1042_s19, %s1355_s19   ;;  %s972_s18 = sphi %s1040_s18, %s1354_s18   ;;  %s968_s17 = sphi %s1038_s17, %s1353_s17   ;;  %s964_s16 = sphi %s1036_s16, %s1352_s16   ;;  %s960_s15 = sphi %s1034_s15, %s1351_s15  }
  0x10   : > { %1314 = sst [smem:[#allocation14_spill]] %s980_s20  ;;  %s597_s27 = sadd.s32 4294967294, %s1000_s25  }
  0x11   : > { %1315 = sst [smem:[#allocation15_spill]] %s984_s21  ;;  %s32_s28 = sadd.s32 1, %s992_s23 }
  0x12   : > { %1316 = sst [smem:[#allocation16_spill]] %s988_s22  ;;  %s35_s29 = sadd.s32 1, %s996_s24 }
  0x13   : > { %1317 = sst [smem:[#allocation17_spill]] %s992_s23  ;;  %p33_p0 = scmp.ge.s32.totalorder %s32_s28, 3 }
  0x14   : > { %1318 = sst [smem:[#allocation18_spill]] %s1000_s25  ;;  %s65_s30 = sadd.s32 1, %s980_s20 }
  0x15   : > { %p72_p1 = scmp.ne.s32.totalorder %s980_s20, %s976_s19  ;;  %p73_p2 = scmp.eq.s32.totalorder %s1000_s25, 0 }
  0x16   : > { %s1359_s28 = smov (%p33_p0, %s32_s28), 0  ;;  %s1361_s29 = smov (!%p33_p0, %s35_s29), %s996_s24 }
  0x17   : > { %1319 = sst [smem:[#allocation19_spill]] %s1359_s28  ;;  %s60_s5 = ssub.s32 %s992_s23, %s1359_s28 }
  0x18   : > { %p1104_p3 = por %p73_p2, %p72_p1  ;;  %p37_p4 = scmp.ge.s32.totalorder %s1361_s29, 3 }
  0x19   : > { %p78_p5 = scmp.ne.s32.totalorder %s976_s19, %s972_s18  ;;  %p79_p6 = scmp.eq.s32.totalorder %s1088_s26, 0 }
  0x1a   : > { %s91_s7 = sadd.s32 1, %s968_s17  ;;  %s1363_s29 = smov (%p37_p4, %s1361_s29), 0 }
  0x1b   : > { %1321 = sst [smem:[#allocation20_spill]] %s1363_s29  ;;  %p1115_p7 = por %p79_p6, %p78_p5 }
  0x1c   : > { %p98_p8 = scmp.ne.s32.totalorder %s968_s17, %s964_s16  ;;  %s61_s9 = ssub.s32 %s996_s24, %s1363_s29 }
  0x1d   : > { %p104_p9 = scmp.ne.s32.totalorder %s964_s16, %s960_s15  ;;  %s62_s10 = sor.u32 %s61_s9, %s60_s5 }
  0x1e   : > { %p89_p10 = scmp.eq.s32.totalorder %s61_s9, 0  ;;  %p63_p11 = scmp.eq.s32.totalorder %s62_s10, 0 }
  0x1f   : > { %p1127_p12 = por %p98_p8, %p73_p2  ;;  %p1139_p13 = por %p104_p9, %p79_p6 }
  0x20   : > { %s1132_s12 = scalar_select %p89_p10, %s968_s17, %s91_s7  }
  0x21   : > { %s1135_s13 = scalar_select %p63_p11, %s980_s20, %s65_s30  }
  0x22   : > { %1324 = sst [smem:[#allocation21_spill]] %s1132_s12  ;;  %p154_p0 = scmp.eq.s32.totalorder %s1088_s26, 8 }
  0x23   : > { %1325 = sst [smem:[#allocation22_spill]] %s1135_s13  ;;  %p160_p1 = scmp.eq.s32.totalorder %s597_s27, 8 }
  0x24   : > { %p1144_p4 = por %p154_p0, %p98_p8  ;;  %p683_p2 = scmp.lt.s32.totalorder %s1000_s25, 9 }
  0x25   : > { %p1149_p5 = por %p160_p1, %p104_p9  ;;  %s207_s30 = sand.u32 1, %s1000_s25  }
  0x26   : > { %s1327_s18 = scalar_select %p1144_p4, 1, 0 }
  0x27   : > { %s1329_s5 = scalar_select %p1149_p5, 1, 0 }
  0x28   : > { %1328 = sst [smem:[#allocation23_spill]] %s1327_s18  ;;  %p1156_p6 = pnand %p683_p2, %p1104_p3 }
  0x29   : > { %1330 = sst [smem:[#allocation24_spill]] %s1329_s5  ;;  %s1300_s9 = sand.u32 1, %s968_s17  }
  0x2a   : > { %s1332_s2 = sld [smem:[#allocation26_spill]]  ;;  %s210_s13 = scalar_lea.vmem [#allocation6], %s1300_s9 }
  0x2b   : > { %s217_s12 = sshll.u32 %s210_s13, 4  ;;  %p1169_p8 = pnand %p683_p2, %p1127_p12  ;;  %s218_s12 = int_to_ptr.vmem [resolvable:$true] %s217_s12 }
  0x2c   : > { %p604_p3 = scmp.ge.s32.totalorder %s1000_s25, 1  ;;  %p239_p9 = scmp.lt.s32.totalorder %s1000_s25, 10 }
  0x2d   : > { %s208_s5 = scalar_lea.sflag [#allocation7], %s207_s30  ;;  %s660_s13 = smul.u32 48, %s992_s23 }
  0x2e   : > { %p1177_p10 = pnand %p604_p3, %p239_p9  ;;  %s1002_s23 = smov 192  }
  0x2f   : > { %s192_s11 = sadd.s32 %s996_s24, %s660_s13  ;;  %s1003_s0 = smov 64  }
  0x30   : > { %s213_s29 = scalar_lea.hbm %s1332_s2, %s996_s24  ;;  %s603_s9 = sshll.u32 %s192_s11, 2 }
  0x31   : > { %s215_s28 = sshll.u32 %s213_s29, 4  ;;  %s183_s29 = sand.u32 1, %s980_s20   ;;  %s216_s28 = int_to_ptr.hbm [resolvable:$true] %s215_s28 }
  0x32   : > { %675 = dma.hbm_to_vmem [thread:$0]  (!%p1169_p8), %s216_s28, 16, %s218_s12, %s208_s5  }
  0x33   : > { %s600_s27 = sshll.u32 %s183_s29, 6  ;;  %s194_s30 = scalar_lea.hbm %s1293_s1, %s603_s9 }
  0x34   : > { %s187_s2 = scalar_lea.vmem [#allocation3], %s600_s27  ;;  %s195_s28 = sshll.u32 %s194_s30, 4  ;;  %s196_s28 = int_to_ptr.hbm [resolvable:$true] %s195_s28 }
  0x35   : > { %s197_s15 = sshll.u32 %s187_s2, 4  ;;  %s230_s20 = scalar_lea.hbm %s1295_s3, %s996_s24  ;;  %s198_s15 = int_to_ptr.vmem [resolvable:$true] %s197_s15 }
  0x36   : > { %s184_s22 = scalar_lea.sflag [#allocation4], %s183_s29  ;;  %s1004_s21 = smov 4  }
  0x37   : > { %672 = dma.hbm_to_vmem [thread:$0]  (!%p1156_p6), %s196_s28, 1024, %s198_s15, %s184_s22, %s1002_s23, %s1003_s0, %s1004_s21  }
  0x38   : > { %s232_s13 = sshll.u32 %s230_s20, 4  ;;  %s1335_s2 = sand.u32 1, %s968_s17   ;;  %s233_s13 = int_to_ptr.hbm [resolvable:$true] %s232_s13 }
  0x39   : > { %s227_s27 = scalar_lea.vmem [#allocation8], %s1335_s2  ;;  %243 = sbr.rel (%p1177_p10) target bundleno = 346 (0x15a), region = 36 }
  0x3a   : > { %s234_s11 = sshll.u32 %s227_s27, 4  ;;  %s245_s4 = sand.u32 (!%p1177_p10), 1, %s976_s19   ;;  %s235_s11 = int_to_ptr.vmem [resolvable:$true] %s234_s11 }
  0x3b   : > { %678 = dma.hbm_to_vmem [thread:$0]  (!%p1169_p8), %s233_s13, 16, %s235_s11, %s208_s5  }
  0x3c   : > { %s605_s25 = sshll.u32 (!%p1177_p10), %s245_s4, 6  ;;  %s246_s18 = scalar_lea.sflag (!%p1177_p10), [#allocation4], %s245_s4 }
  0x3d   : > { %s1200_s9 = scalar_lea.vmem (!%p1177_p10), [#allocation3], %s605_s25 }
  0x3e   : > { %947 = dma.done.wait (%p1115_p7), %s246_s18, 1024  }
  0x3f   : > { %949 = vsyncadd (%p1115_p7), %s246_s18, 4294966272  ;;  %s255_s0 = sand.u32 1, %s1088_s26   ;;  %s1208_s15 = sand.u32 1, %s964_s16  }
  0x40   : > { %s256_s20 = scalar_lea.sflag [#allocation7], %s255_s0  ;;  %s258_s21 = scalar_lea.vmem [#allocation6], %s1208_s15 }
  0x41   : > { %951 = dma.done.wait (%p1139_p13), %s256_s20, 32  }
  0x42   : > { %953 = vsyncadd (%p1139_p13), %s256_s20, 4294967264  ;;  %s606_s22 = sshll.u32 %s1208_s15, 4  ;;  %s267_s23 = scalar_lea.vmem [#allocation8], %s1208_s15 }
  0x43   : > { %s1217_s8 = scalar_lea.vmem [#allocation9], %s606_s22  ;;  %s1336_s5 = sld [smem:[#allocation15_spill]] }
  0x49   : > { %p607_p7 = scmp.ne.s32.totalorder %s1336_s5, 0 }
  0x4b   : > { %305 = sbr.rel (%p607_p7) target bundleno = 83 (0x53), region = 52 }
  0x50   : > { %v1005_v0 = vmov 0.0  }
  0x51   : > { %306 = vst [vmem:[#allocation2] sm:$0xff] %v1005_v0 }
  0x52   : > { %307 = vst [vmem:[#allocation2 + $0x8] sm:$0xff] %v1005_v0 }
  0x53 PF: > { %s1337_s26 = sld [smem:[#allocation15_spill]]  ;;  %v659_v1 = vld [vmem:[%s1200_s9 + $0x38] sm:$0xff]  ;;  %v658_v2 = vld [vmem:[%s1200_s9 + $0x30] sm:$0xff]  ;;  %v657_v3 = vld [vmem:[%s1200_s9 + $0x28] sm:$0xff] }
  0x54   : > { %387 = vmatpush.bf16.msra.mxu0 %v659_v1  ;;  %v656_v4 = vld [vmem:[%s1200_s9 + $0x20] sm:$0xff]  ;;  %v655_v5 = vld [vmem:[%s1200_s9 + $0x18] sm:$0xff]  ;;  %v654_v6 = vld [vmem:[%s1200_s9 + $0x10] sm:$0xff]  ;;  %s1338_s30 = sld [smem:[#allocation25_spill]] }
  0x55   : > { %v653_v7 = vld [vmem:[%s1200_s9 + $0x8] sm:$0xff]  ;;  %v652_v8 = vld [vmem:[%s1200_s9] sm:$0xff] }
  0x58   : > { %388 = vmatpush.bf16.msra.mxu0 %v658_v2  ;;  %v315_v12 = vld [vmem:[#allocation2] sm:$0xff] }
  0x59   : > { %s608_s14 = sshll.u32 %s1337_s26, 7  ;;  %v316_v15 = vld [vmem:[#allocation2 + $0x8] sm:$0xff]  ;;  %p646_p11 = scmp.ne.s32.totalorder %s1337_s26, 2 }
  0x5a   : > { %s309_s7 = sshra.s32 %s608_s14, 7 }
  0x5b   : > { %s609_s6 = sshll.u32 %s309_s7, 2 }
  0x5c   : > { %389 = vmatpush.bf16.msra.mxu0 %v657_v3  ;;  %s312_s28 = scalar_lea.vmem %s1338_s30, %s609_s6 }
  0x5d   : > { %v612_v9 = vld [vmem:[%s312_s28] sm:$0xf]  ;;  %v651_v10 = vld [vmem:[%s312_s28 + $0x8] sm:$0xf0] }
  0x5e   : > { %v613_v11 = vor.u32 %v651_v10, %v612_v9 }
  0x60   : > { %390 = vmatpush.bf16.msra.mxu0 %v656_v4 }
  0x64   : > { %391 = vmatpush.bf16.msra.mxu0 %v655_v5 }
  0x68   : > { %392 = vmatpush.bf16.msra.mxu0 %v654_v6 }
  0x6c   : > { %393 = vmatpush.bf16.msra.mxu0 %v653_v7 }
  0x70   : > { %394 = vmatpush.bf16.msra.mxu0 %v652_v8 }
  0x73   : > { %395 = vmatmul.bf16.vlgmr.msra.gmra.mxu0 %v613_v11 }
  0xf0   : > { %v396_v13 = vpop.f32.mrf.mxu0 }
  0xf1   : > { %v401_v14 = vadd.f32 %v396_v13, %v315_v12 }
  0xf3   : > { %403 = vst [vmem:[#allocation2] sm:$0xff] %v401_v14 }
  0xf7   : > { %408 = sbr.rel (%p646_p11) target bundleno = 323 (0x143), region = 56 }
  0xf8   : > { %v398_v16 = vpop.f32.mrf.mxu0 }
  0xf9   : > { %v402_v17 = vadd.f32 %v398_v16, %v316_v15 }
  0xfb   : > { %404 = vst [vmem:[#allocation2 + $0x8] sm:$0xff] %v402_v17 }
  0xfc   : > { %v409_v18 = vld [vmem:[#allocation2] sm:$0xff] }
  0xfd   : > { %v780_v47 = vld [vmem:[%s258_s21] ss:$0 sm:$0xff] }
  0xfe   : > { %v781_v50 = vld [vmem:[%s267_s23] ss:$0 sm:$0xff] }
 0x102   : > { %v410_v19 = vld [vmem:[#allocation2 + $0x8] sm:$0xff] }
 0x103   : > { %v411_v20 = vadd.f32 %v410_v19, %v409_v18 }
 0x105   : > { %v412_v21 = vrot.slane %v411_v20, 4 }
 0x107   : > { %v413_v22 = vadd.f32 %v412_v21, %v411_v20 }
 0x109   : > { %v414_v23 = vrot.slane %v413_v22, 2 }
 0x10b   : > { %v415_v24 = vadd.f32 %v414_v23, %v413_v22 }
 0x10d   : > { %v416_v25 = vrot.slane %v415_v24, 1 }
 0x10f   : > { %v417_v26 = vadd.f32 %v416_v25, %v415_v24 }
 0x111   : > { %v418_v27 = vmul.f32 0.0625, %v417_v26 }
 0x113   : > { %v419_v28 = vsub.f32 %v409_v18, %v418_v27  ;;  %v420_v29 = vsub.f32 %v410_v19, %v418_v27 }
 0x115   : > { %v421_v30 = vmul.f32 %v419_v28, %v419_v28  ;;  %v422_v31 = vmul.f32 %v420_v29, %v420_v29 }
 0x117   : > { %v423_v32 = vadd.f32 %v422_v31, %v421_v30 }
 0x119   : > { %v424_v33 = vrot.slane %v423_v32, 4 }
 0x11b   : > { %v425_v34 = vadd.f32 %v424_v33, %v423_v32 }
 0x11d   : > { %v426_v35 = vrot.slane %v425_v34, 2 }
 0x11f   : > { %v427_v36 = vadd.f32 %v426_v35, %v425_v34 }
 0x121   : > { %v428_v37 = vrot.slane %v427_v36, 1 }
 0x123   : > { %v429_v38 = vadd.f32 %v428_v37, %v427_v36 }
 0x125   : > { %v430_v39 = vmul.f32 0.0625, %v429_v38 }
 0x127   : > { %v431_v40 = vadd.f32 1e-05, %v430_v39 }
 0x129   : > { %782 = vrsqrt.f32 %v431_v40  ;;  %vm438_vm0 = vweird.f32 %v431_v40 }
 0x12f   : > { %v783_v41 = vpop.eup %782 }
 0x130   : > { %v433_v42 = vmul.f32 %v783_v41, %v431_v40  ;;  %vm439_vm1 = vweird.f32 %v783_v41 }
 0x131   : > { %vm440_vm2 = vmor %vm438_vm0, %vm439_vm1 }
 0x132   : > { %v434_v43 = vmul.f32 %v783_v41, %v433_v42 }
 0x134   : > { %v435_v44 = vmul.f32 0.5, %v434_v43 }
 0x136   : > { %v436_v45 = vsub.f32 1.5, %v435_v44 }
 0x138   : > { %v437_v46 = vmul.f32 %v783_v41, %v436_v45 }
 0x13a   : > { %v441_v48 = vsel %vm440_vm2, %v783_v41, %v437_v46 }
 0x13b   : > { %v442_v49 = vmul.f32 %v441_v48, %v419_v28  ;;  %v443_v51 = vmul.f32 %v441_v48, %v420_v29 }
 0x13d   : > { %v448_v52 = vmul.f32 %v780_v47, %v442_v49  ;;  %v449_v53 = vmul.f32 %v780_v47, %v443_v51 }
 0x13f   : > { %v454_v54 = vadd.f32 %v781_v50, %v448_v52  ;;  %v455_v55 = vadd.f32 %v781_v50, %v449_v53 }
 0x141   : > { %456 = vst [vmem:[%s1217_s8] sm:$0xff] %v454_v54 }
 0x142   : > { %457 = vst [vmem:[%s1217_s8 + $0x8] sm:$0xff] %v455_v55 }
 0x143 PF: > { %s1339_s12 = sld [smem:[#allocation16_spill]]  ;;  %s470_s18 = sshll.u32 %s1217_s8, 4  ;;  %s471_s18 = int_to_ptr.vmem [resolvable:$true] %s470_s18 }
 0x144   : > { %s1341_s4 = sld [smem:[#allocation27_spill]]  ;;  %s459_s0 = scalar_lea.sflag [#allocation5], %s1208_s15 }
 0x149   : > { %s648_s2 = sshll.u32 %s1339_s12, 3 }
 0x14a   : > { %s469_s25 = scalar_lea.hbm %s1341_s4, %s648_s2  ;;  %s894_s5 = scalar_lea.hbm %s1341_s4, 48 }
 0x14b   : > { %s472_s9 = sshll.u32 %s469_s25, 4  ;;  %s473_s9 = int_to_ptr.hbm [resolvable:$true] %s472_s9 }
 0x14c   : > { %s888_s20 = sshra.s32 %s473_s9, 4  ;;  %s889_s20 = int_to_ptr.hbm [resolvable:$true] %s888_s20 }
 0x14d   : > { %s890_s21 = scalar_lea.hbm %s889_s20, 16  ;;  %p895_p1 = scmp.lt.s32.totalorder %s889_s20, %s1341_s4 }
 0x14e   : > { %p891_p12 = scmp.ne.s32.totalorder %s889_s20, %s890_s21  ;;  %p896_p2 = scmp.lt.s32.totalorder %s894_s5, %s890_s21 }
 0x150   : > { %p892_p13 = pnand %p891_p12, %p1144_p4  ;;  %p897_p6 = por %p896_p2, %p895_p1 }
 0x152   : > { %p893_p0 = pneg %p892_p13 }
 0x154   : > { %p898_p8 = pnand %p897_p6, %p893_p0 }
 0x156   : > { %901 = shalt.err (!%p898_p8)
}
 0x157   : > { %s1006_s15 = smov 128   ;;  %s1007_s8 = smov 384  }
 0x158   : > { %s1008_s7 = smov 8  }
 0x159   : > { %667 = dma.vmem_to_hbm [thread:$0]  (%p1144_p4), %s471_s18, 256, %s473_s9, %s459_s0, %s1006_s15, %s1007_s8, %s1008_s7  }
 0x15a PF: > { %s1342_s6 = sld [smem:[#allocation18_spill]] }
 0x15b   : > { %s1343_s10 = sld [smem:[#allocation13_spill]] }
 0x160   : > { %p684_p3 = scmp.ge.s32.totalorder %s1342_s6, 2 }
 0x161   : > { %s487_s30 = sand.u32 1, %s1343_s10  }
 0x162   : > { %p680_p9 = pnand %p684_p3, %p1149_p5  ;;  %s488_s28 = scalar_lea.sflag [#allocation5], %s487_s30 }
 0x164   : > { %p681_p10 = pneg %p680_p9 }
 0x166   : > { %955 = dma.done.wait (%p681_p10), %s488_s28, 256  }
 0x167   : > { %957 = vsyncadd (%p681_p10), %s488_s28, 4294967040  ;;  %s23_s25 = sadd.s32 1, %s1342_s6   ;;  %s1345_s12 = sld [smem:[#allocation21_spill]] }
 0x168   : > { %p20_p7 = scmp.ge.s32.totalorder %s23_s25, 11   ;;  %s1346_s13 = sld [smem:[#allocation14_spill]] }
 0x169   : > { %s1347_s20 = sld [smem:[#allocation22_spill]]  ;;  %s1351_s15 = smov %s964_s16 }
 0x16a   : > { %s1348_s21 = sld [smem:[#allocation17_spill]]  ;;  %s1352_s16 = smov %s968_s17 }
 0x16b   : > { %s1349_s23 = sld [smem:[#allocation19_spill]]  ;;  %s1354_s18 = smov %s976_s19 }
 0x16c   : > { %s1350_s2 = sld [smem:[#allocation20_spill]]  ;;  %s1356_s22 = smov %s996_s24 }
 0x16d   : > { %s1353_s17 = smov %s1345_s12 }
 0x16e   : > { %s1355_s19 = smov %s1346_s13  ;;  %22 = sbr.rel (!%p20_p7) target bundleno = 15 (0xf), region = 114 }
 0x172   : > { %s1357_s24 = smov %s1350_s2 }
 0x173   :  { %494 = vsyncpa [#allocation4], 1 }
 0x174   :  { %496 = vsyncpa [#allocation4 + $0x1], 1 }
 0x175   :  { %497 = vsyncpa [#allocation7], 1 }
 0x176   :  { %499 = vsyncpa [#allocation7 + $0x1], 1 }
 0x177   :  { %500 = vsyncpa [#allocation5], 1 }
 0x178   :  { %502 = vsyncpa [#allocation5 + $0x1], 1 }

// kernel: projection_mlp.4
= control target key start
LH: loop header
LB: loop body
LE: loop exit
PB: predicated region body
PF: predicated region fallthrough
CT: control target
= control target key end

     0   :  { %s1262_s0 = inlined_call_operand.vmem [shape: bf16[16,384], index: 0, kind: input, shape index: {}]   ;;  %s1263_s1 = inlined_call_operand.hbm [shape: bf16[384,384], index: 1, kind: input, shape index: {}]   ;;  %s1264_s2 = inlined_call_operand.hbm [shape: f32[1,384], index: 2, kind: input, shape index: {}]   ;;  %s1265_s3 = inlined_call_operand.hbm [shape: f32[1,384], index: 3, kind: input, shape index: {}]   ;;  %s1266_s4 = inlined_call_operand.vmem [shape: bf16[16,384], index: 4, kind: output, shape index: {}]  }
   0x1   :  { %1275 = sst [smem:[#allocation21_spill]] %s1262_s0 }
   0x2   :  { %1276 = sst [smem:[#allocation22_spill]] %s1264_s2 }
   0x3   :  { %1277 = sst [smem:[#allocation23_spill]] %s1266_s4 }
   0x4   :  { %9 = vsyncpa [#allocation4], 0 }
   0x5   :  { %11 = vsyncpa [#allocation4 + $0x1], 0 }
   0x6   :  { %12 = vsyncpa [#allocation6], 0 }
   0x7   :  { %14 = vsyncpa [#allocation6 + $0x1], 0  ;;  %s1022_s15 = smov 0   ;;  %s1024_s16 = smov 0  }
   0x8   :  { %s1026_s17 = smov 0   ;;  %s1028_s18 = smov 0  }
   0x9   :  { %s1030_s19 = smov 0   ;;  %s1032_s20 = smov 0  }
   0xa   :  { %s1034_s21 = smov 0   ;;  %s1036_s22 = smov 0  }
   0xb   :  { %s1038_s23 = smov 0   ;;  %s1040_s24 = smov 0  }
   0xc   :  { %s1042_s25 = smov 0  }
   0xd LB: > { %1278 = sst [smem:[#allocation11_spill]] %s971_s20  ;;  %s1076_s26 = sadd.s32 4294967295, %s991_s25   ;;  %s991_s25 = sphi %s1042_s25, %s20_s25   ;;  %s987_s24 = sphi %s1040_s24, %s1317_s24   ;;  %s983_s23 = sphi %s1038_s23, %s1309_s23   ;;  %s979_s22 = sphi %s1036_s22, %s1316_s22   ;;  %s975_s21 = sphi %s1034_s21, %s1308_s21   ;;  %s971_s20 = sphi %s1032_s20, %s1307_s20   ;;  %s967_s19 = sphi %s1030_s19, %s1315_s19   ;;  %s963_s18 = sphi %s1028_s18, %s1314_s18   ;;  %s959_s17 = sphi %s1026_s17, %s1313_s17   ;;  %s955_s16 = sphi %s1024_s16, %s1312_s16   ;;  %s951_s15 = sphi %s1022_s15, %s1311_s15  }
   0xe   : > { %1279 = sst [smem:[#allocation12_spill]] %s975_s21  ;;  %s29_s27 = sadd.s32 1, %s983_s23 }
   0xf   : > { %1280 = sst [smem:[#allocation13_spill]] %s979_s22  ;;  %p30_p0 = scmp.ge.s32.totalorder %s29_s27, 3 }
  0x10   : > { %1281 = sst [smem:[#allocation14_spill]] %s983_s23  ;;  %s32_s28 = sadd.s32 1, %s987_s24 }
  0x11   : > { %1282 = sst [smem:[#allocation15_spill]] %s991_s25  ;;  %s62_s29 = sadd.s32 1, %s971_s20 }
  0x12   : > { %p69_p1 = scmp.ne.s32.totalorder %s971_s20, %s967_s19  ;;  %s1319_s27 = smov (%p30_p0, %s29_s27), 0 }
  0x13   : > { %1283 = sst [smem:[#allocation16_spill]] %s1319_s27  ;;  %s1321_s28 = smov (!%p30_p0, %s32_s28), %s987_s24 }
  0x14   : > { %s57_s30 = ssub.s32 %s983_s23, %s1319_s27  ;;  %p70_p2 = scmp.eq.s32.totalorder %s991_s25, 0 }
  0x15   : > { %p34_p3 = scmp.ge.s32.totalorder %s1321_s28, 3  ;;  %p75_p4 = scmp.ne.s32.totalorder %s967_s19, %s963_s18 }
  0x16   : > { %p1092_p5 = por %p70_p2, %p69_p1  ;;  %p76_p6 = scmp.eq.s32.totalorder %s1076_s26, 0 }
  0x17   : > { %s1323_s28 = smov (%p34_p3, %s1321_s28), 0  ;;  %s88_s7 = sadd.s32 1, %s959_s17 }
  0x18   : > { %1285 = sst [smem:[#allocation17_spill]] %s1323_s28  ;;  %p1101_p7 = por %p76_p6, %p75_p4 }
  0x19   : > { %s58_s8 = ssub.s32 %s987_s24, %s1323_s28  ;;  %p95_p8 = scmp.ne.s32.totalorder %s959_s17, %s955_s16 }
  0x1a   : > { %s59_s9 = sor.u32 %s58_s8, %s57_s30  ;;  %p86_p9 = scmp.eq.s32.totalorder %s58_s8, 0 }
  0x1b   : > { %p60_p10 = scmp.eq.s32.totalorder %s59_s9, 0  ;;  %p1112_p11 = por %p95_p8, %p70_p2 }
  0x1c   : > { %s1117_s11 = scalar_select %p86_p9, %s959_s17, %s88_s7  }
  0x1d   : > { %s1120_s12 = scalar_select %p60_p10, %s971_s20, %s62_s29  }
  0x1e   : > { %1288 = sst [smem:[#allocation18_spill]] %s1117_s11  ;;  %p101_p12 = scmp.ne.s32.totalorder %s955_s16, %s951_s15 }
  0x1f   : > { %1289 = sst [smem:[#allocation19_spill]] %s1120_s12  ;;  %p151_p13 = scmp.eq.s32.totalorder %s1076_s26, 8 }
  0x20   : > { %p710_p0 = scmp.lt.s32.totalorder %s991_s25, 9  ;;  %p1128_p1 = por %p101_p12, %p76_p6 }
  0x21   : > { %p1132_p3 = por %p151_p13, %p95_p8  ;;  %s204_s29 = sand.u32 1, %s991_s25  }
  0x22   : > { %p1138_p2 = pnand %p710_p0, %p1092_p5  ;;  %s1269_s15 = sand.u32 1, %s959_s17  }
  0x23   : > { %s1291_s14 = scalar_select %p1132_p3, 1, 0 }
  0x24   : > { %s1294_s2 = sld [smem:[#allocation22_spill]]  ;;  %s207_s9 = scalar_lea.vmem [#allocation5], %s1269_s15 }
  0x25   : > { %1292 = sst [smem:[#allocation20_spill]] %s1291_s14  ;;  %s214_s28 = sshll.u32 %s207_s9, 4  ;;  %s215_s28 = int_to_ptr.vmem [resolvable:$true] %s214_s28 }
  0x26   : > { %p1152_p4 = pnand %p710_p0, %p1112_p11  ;;  %p632_p5 = scmp.ge.s32.totalorder %s991_s25, 1 }
  0x27   : > { %p236_p6 = scmp.lt.s32.totalorder %s991_s25, 10  ;;  %s205_s12 = scalar_lea.sflag [#allocation6], %s204_s29 }
  0x28   : > { %s180_s7 = sand.u32 1, %s971_s20   ;;  %s693_s9 = smul.u32 48, %s983_s23 }
  0x29   : > { %p1160_p8 = pnand %p632_p5, %p236_p6  ;;  %s227_s14 = scalar_lea.hbm %s1265_s3, %s987_s24 }
  0x2a   : > { %s210_s8 = scalar_lea.hbm %s1294_s2, %s987_s24  ;;  %s189_s2 = sadd.s32 %s987_s24, %s693_s9 }
  0x2b   : > { %s212_s27 = sshll.u32 %s210_s8, 4  ;;  %s628_s8 = sshll.u32 %s180_s7, 6  ;;  %s213_s27 = int_to_ptr.hbm [resolvable:$true] %s212_s27 }
  0x2c   : > { %706 = dma.hbm_to_vmem [thread:$0]  (!%p1152_p4), %s213_s27, 16, %s215_s28, %s205_s12  }
  0x2d   : > { %s184_s10 = scalar_lea.vmem [#allocation3], %s628_s8  ;;  %s631_s11 = sshll.u32 %s189_s2, 2 }
  0x2e   : > { %s194_s15 = sshll.u32 %s184_s10, 4  ;;  %s191_s29 = scalar_lea.hbm %s1263_s1, %s631_s11  ;;  %s195_s15 = int_to_ptr.vmem [resolvable:$true] %s194_s15 }
  0x2f   : > { %s192_s27 = sshll.u32 %s191_s29, 4  ;;  %s229_s20 = sshll.u32 %s227_s14, 4  ;;  %s193_s27 = int_to_ptr.hbm [resolvable:$true] %s192_s27  ;;  %s230_s20 = int_to_ptr.hbm [resolvable:$true] %s229_s20 }
  0x30   : > { %s181_s0 = scalar_lea.sflag [#allocation4], %s180_s7  ;;  %s993_s23 = smov 192  }
  0x31   : > { %s994_s8 = smov 64   ;;  %s995_s21 = smov 4  }
  0x32   : > { %703 = dma.hbm_to_vmem [thread:$0]  (!%p1138_p2), %s193_s27, 1024, %s195_s15, %s181_s0, %s993_s23, %s994_s8, %s995_s21  }
  0x33   : > { %s1297_s9 = sand.u32 1, %s959_s17   ;;  %240 = sbr.rel (%p1160_p8) target bundleno = 330 (0x14a), region = 36 }
  0x34   : > { %s224_s2 = scalar_lea.vmem [#allocation7], %s1297_s9  ;;  %s242_s4 = sand.u32 (!%p1160_p8), 1, %s967_s19  }
  0x35   : > { %s231_s10 = sshll.u32 %s224_s2, 4  ;;  %s633_s22 = sshll.u32 (!%p1160_p8), %s242_s4, 6  ;;  %s232_s10 = int_to_ptr.vmem [resolvable:$true] %s231_s10 }
  0x36   : > { %709 = dma.hbm_to_vmem [thread:$0]  (!%p1152_p4), %s230_s20, 16, %s232_s10, %s205_s12  }
  0x37   : > { %s243_s25 = scalar_lea.sflag (!%p1160_p8), [#allocation4], %s242_s4  ;;  %s1183_s11 = scalar_lea.vmem (!%p1160_p8), [#allocation3], %s633_s22 }
  0x38   : > { %942 = dma.done.wait (%p1101_p7), %s243_s25, 1024  }
  0x39   : > { %944 = vsyncadd (%p1101_p7), %s243_s25, 4294966272  ;;  %s252_s0 = sand.u32 1, %s1076_s26   ;;  %s1191_s20 = sand.u32 1, %s955_s16  }
  0x3a   : > { %s253_s21 = scalar_lea.sflag [#allocation6], %s252_s0  ;;  %s255_s23 = scalar_lea.vmem [#allocation5], %s1191_s20 }
  0x3b   : > { %946 = dma.done.wait (%p1128_p1), %s253_s21, 32  }
  0x3c   : > { %948 = vsyncadd (%p1128_p1), %s253_s21, 4294967264  ;;  %s634_s12 = sshll.u32 %s1191_s20, 3  ;;  %s264_s14 = scalar_lea.vmem [#allocation7], %s1191_s20 }
  0x3d   : > { %s1200_s6 = scalar_lea.vmem [#allocation8], %s634_s12  ;;  %s1298_s18 = sld [smem:[#allocation12_spill]] }
  0x43   : > { %p635_p7 = scmp.ne.s32.totalorder %s1298_s18, 0 }
  0x45   : > { %301 = sbr.rel (%p635_p7) target bundleno = 77 (0x4d), region = 52 }
  0x4a   : > { %v996_v0 = vmov 0.0  }
  0x4b   : > { %302 = vst [vmem:[#allocation2] sm:$0xff] %v996_v0 }
  0x4c   : > { %303 = vst [vmem:[#allocation2 + $0x8] sm:$0xff] %v996_v0 }
  0x4d PF: > { %s1299_s26 = sld [smem:[#allocation12_spill]]  ;;  %v687_v1 = vld [vmem:[%s1183_s11 + $0x38] sm:$0xff]  ;;  %v686_v2 = vld [vmem:[%s1183_s11 + $0x30] sm:$0xff]  ;;  %v685_v3 = vld [vmem:[%s1183_s11 + $0x28] sm:$0xff] }
  0x4e   : > { %383 = vmatpush.bf16.msra.mxu0 %v687_v1  ;;  %v684_v4 = vld [vmem:[%s1183_s11 + $0x20] sm:$0xff]  ;;  %v683_v5 = vld [vmem:[%s1183_s11 + $0x18] sm:$0xff]  ;;  %v682_v6 = vld [vmem:[%s1183_s11 + $0x10] sm:$0xff]  ;;  %s1300_s29 = sld [smem:[#allocation21_spill]] }
  0x4f   : > { %v681_v7 = vld [vmem:[%s1183_s11 + $0x8] sm:$0xff]  ;;  %v680_v8 = vld [vmem:[%s1183_s11] sm:$0xff] }
  0x52   : > { %384 = vmatpush.bf16.msra.mxu0 %v686_v2  ;;  %v311_v12 = vld [vmem:[#allocation2] sm:$0xff] }
  0x53   : > { %s636_s13 = sshll.u32 %s1299_s26, 7  ;;  %v312_v15 = vld [vmem:[#allocation2 + $0x8] sm:$0xff]  ;;  %p674_p9 = scmp.ne.s32.totalorder %s1299_s26, 2 }
  0x54   : > { %s305_s15 = sshra.s32 %s636_s13, 7 }
  0x55   : > { %s637_s5 = sshll.u32 %s305_s15, 2 }
  0x56   : > { %385 = vmatpush.bf16.msra.mxu0 %v685_v3  ;;  %s308_s27 = scalar_lea.vmem %s1300_s29, %s637_s5 }
  0x57   : > { %v640_v9 = vld [vmem:[%s308_s27] sm:$0xf]  ;;  %v679_v10 = vld [vmem:[%s308_s27 + $0x8] sm:$0xf0] }
  0x58   : > { %v641_v11 = vor.u32 %v679_v10, %v640_v9 }
  0x5a   : > { %386 = vmatpush.bf16.msra.mxu0 %v684_v4 }
  0x5e   : > { %387 = vmatpush.bf16.msra.mxu0 %v683_v5 }
  0x62   : > { %388 = vmatpush.bf16.msra.mxu0 %v682_v6 }
  0x66   : > { %389 = vmatpush.bf16.msra.mxu0 %v681_v7 }
  0x6a   : > { %390 = vmatpush.bf16.msra.mxu0 %v680_v8 }
  0x6d   : > { %391 = vmatmul.bf16.vlgmr.msra.gmra.mxu0 %v641_v11 }
  0xea   : > { %v392_v13 = vpop.f32.mrf.mxu0 }
  0xeb   : > { %v397_v14 = vadd.f32 %v392_v13, %v311_v12 }
  0xed   : > { %399 = vst [vmem:[#allocation2] sm:$0xff] %v397_v14 }
  0xf1   : > { %404 = sbr.rel (%p674_p9) target bundleno = 320 (0x140), region = 56 }
  0xf2   : > { %v394_v16 = vpop.f32.mrf.mxu0 }
  0xf3   : > { %v398_v17 = vadd.f32 %v394_v16, %v312_v15 }
  0xf5   : > { %400 = vst [vmem:[#allocation2 + $0x8] sm:$0xff] %v398_v17 }
  0xf6   : > { %v405_v18 = vld [vmem:[#allocation2] sm:$0xff] }
  0xf7   : > { %v803_v47 = vld [vmem:[%s255_s23] ss:$0 sm:$0xff] }
  0xf8   : > { %v804_v51 = vld [vmem:[%s264_s14] ss:$0 sm:$0xff] }
  0xfc   : > { %v406_v19 = vld [vmem:[#allocation2 + $0x8] sm:$0xff] }
  0xfd   : > { %v407_v20 = vadd.f32 %v406_v19, %v405_v18 }
  0xff   : > { %v408_v21 = vrot.slane %v407_v20, 4 }
 0x101   : > { %v409_v22 = vadd.f32 %v408_v21, %v407_v20 }
 0x103   : > { %v410_v23 = vrot.slane %v409_v22, 2 }
 0x105   : > { %v411_v24 = vadd.f32 %v410_v23, %v409_v22 }
 0x107   : > { %v412_v25 = vrot.slane %v411_v24, 1 }
 0x109   : > { %v413_v26 = vadd.f32 %v412_v25, %v411_v24 }
 0x10b   : > { %v414_v27 = vmul.f32 0.0625, %v413_v26 }
 0x10d   : > { %v415_v28 = vsub.f32 %v405_v18, %v414_v27  ;;  %v416_v29 = vsub.f32 %v406_v19, %v414_v27 }
 0x10f   : > { %v417_v30 = vmul.f32 %v415_v28, %v415_v28  ;;  %v418_v31 = vmul.f32 %v416_v29, %v416_v29 }
 0x111   : > { %v419_v32 = vadd.f32 %v418_v31, %v417_v30 }
 0x113   : > { %v420_v33 = vrot.slane %v419_v32, 4 }
 0x115   : > { %v421_v34 = vadd.f32 %v420_v33, %v419_v32 }
 0x117   : > { %v422_v35 = vrot.slane %v421_v34, 2 }
 0x119   : > { %v423_v36 = vadd.f32 %v422_v35, %v421_v34 }
 0x11b   : > { %v424_v37 = vrot.slane %v423_v36, 1 }
 0x11d   : > { %v425_v38 = vadd.f32 %v424_v37, %v423_v36 }
 0x11f   : > { %v426_v39 = vmul.f32 0.0625, %v425_v38 }
 0x121   : > { %v427_v40 = vadd.f32 1e-05, %v426_v39 }
 0x123   : > { %805 = vrsqrt.f32 %v427_v40  ;;  %vm434_vm0 = vweird.f32 %v427_v40 }
 0x129   : > { %v806_v41 = vpop.eup %805 }
 0x12a   : > { %v429_v42 = vmul.f32 %v806_v41, %v427_v40  ;;  %vm435_vm1 = vweird.f32 %v806_v41 }
 0x12b   : > { %vm436_vm2 = vmor %vm434_vm0, %vm435_vm1 }
 0x12c   : > { %v430_v43 = vmul.f32 %v806_v41, %v429_v42 }
 0x12e   : > { %v431_v44 = vmul.f32 0.5, %v430_v43 }
 0x130   : > { %v432_v45 = vsub.f32 1.5, %v431_v44 }
 0x132   : > { %v433_v46 = vmul.f32 %v806_v41, %v432_v45 }
 0x134   : > { %v437_v48 = vsel %vm436_vm2, %v806_v41, %v433_v46 }
 0x135   : > { %v438_v49 = vmul.f32 %v437_v48, %v415_v28  ;;  %v439_v50 = vmul.f32 %v437_v48, %v416_v29 }
 0x137   : > { %v444_v52 = vmul.f32 %v803_v47, %v438_v49  ;;  %v445_v53 = vmul.f32 %v803_v47, %v439_v50 }
 0x139   : > { %v450_v54 = vadd.f32 %v804_v51, %v444_v52  ;;  %v451_v55 = vadd.f32 %v804_v51, %v445_v53 }
 0x13b   : > { %v452_v56 = vmax.f32 %v450_v54, 0.0  ;;  %v453_v57 = vmax.f32 %v451_v55, 0.0 }
 0x13d   : > { %v691_v58 = vpack.c.bf16 %v453_v57, %v452_v56 }
 0x13f   : > { %692 = vst [vmem:[%s1200_s6] sm:$0xff] %v691_v58  }
 0x140 PF: > { %464 = sbr.rel (!%p1132_p3) target bundleno = 330 (0x14a), region = 60  ;;  %s1302_s8 = sld [smem:[#allocation13_spill]] (%p1132_p3) }
 0x141   : > { %s1303_s4 = sld [smem:[#allocation23_spill]] (%p1132_p3) }
 0x146   : > { %s676_s9 = sshll.u32 %s1302_s8, 2  ;;  %v483_v59 = vld [vmem:[%s1200_s6] sm:$0xf]  ;;  %v485_v60 = vld [vmem:[%s1200_s6 + $0x4] sm:$0xf] }
 0x147   : > { %s466_s22 = scalar_lea.vmem %s1303_s4, %s676_s9 }
 0x148   : > { %484 = vst [vmem:[%s466_s22] sm:$0xf] %v483_v59 }
 0x149   : > { %486 = vst [vmem:[%s466_s22 + $0xc] sm:$0xf] %v485_v60 }
 0x14a PF: > { %s1304_s25 = sld [smem:[#allocation15_spill]]  ;;  %s1311_s15 = smov %s955_s16 }
 0x14b   : > { %s1305_s11 = sld [smem:[#allocation18_spill]]  ;;  %s1312_s16 = smov %s959_s17 }
 0x14c   : > { %s1306_s0 = sld [smem:[#allocation11_spill]]  ;;  %s1314_s18 = smov %s967_s19 }
 0x14d   : > { %s1307_s20 = sld [smem:[#allocation19_spill]]  ;;  %s1316_s22 = smov %s987_s24 }
 0x14e   : > { %s1308_s21 = sld [smem:[#allocation14_spill]] }
 0x14f   : > { %s1309_s23 = sld [smem:[#allocation16_spill]] }
 0x150   : > { %s20_s25 = sadd.s32 1, %s1304_s25   ;;  %s1310_s12 = sld [smem:[#allocation17_spill]] }
 0x151   : > { %p17_p10 = scmp.ge.s32.totalorder %s20_s25, 11   ;;  %s1313_s17 = smov %s1305_s11 }
 0x152   : > { %s1315_s19 = smov %s1306_s0 }
 0x153   :  { %19 = sbr.rel (!%p17_p10) target bundleno = 13 (0xd), region = 150 }
 0x156   : > { %s1317_s24 = smov %s1310_s12 }
 0x158   :  { %524 = vsyncpa [#allocation4], 1 }
 0x159   :  { %526 = vsyncpa [#allocation4 + $0x1], 1 }
 0x15a   :  { %527 = vsyncpa [#allocation6], 1 }
 0x15b   :  { %529 = vsyncpa [#allocation6 + $0x1], 1 }

</bundles_post_ra>
